<compile_context>
chip_gen: v7x
topology: tpu7x:2x2x1
jax: 0.10.0
libtpu: 0.0.40
codegen_flags: <defaults>
</compile_context>

<pallas_src>
import functools

import jax
import jax.numpy as jnp
from jax import lax
from jax.experimental import pallas as pl
from jax.experimental.pallas import tpu as pltpu

KSIZE = 7
PAD = KSIZE // 2


def _spatial_gate_kernel(w_ref, shift_ref, cmask_ref, rmask_ref, x_ref, o_ref,
                         *, W):
    """One grid step: B images with spatial flattened to the lane axis.

    w_ref     : SMEM (2*7*7,) f32   conv weight (BN scale folded), [c, kh, kw]
    shift_ref : SMEM (1,)     f32   folded BatchNorm shift
    cmask_ref : VMEM (7, 1, HW) f32 column-validity mask per kw tap
    rmask_ref : VMEM (7, 1, HW) f32 row-validity mask per kh tap
    x_ref     : VMEM (B, C, HW)     input block (native dtype)
    o_ref     : VMEM (B, C, HW)     output block
    """
    B, C, HW = x_ref.shape
    x = x_ref[...]                                        # native dtype

    # Channel pooling -> lane-dense (B, HW) maps; mean accumulates in f32.
    max_map = jnp.max(x, axis=1).astype(jnp.float32)
    avg_map = jnp.sum(x.astype(jnp.float32), axis=1) * jnp.float32(1.0 / C)
    feats = (max_map, avg_map)

    # 7x7 conv over the flattened spatial axis, factored as column taps shared
    # across row taps:
    #   u[kh] = sum_{kw,c} w[c,kh,kw] * colshift_kw(feat_c)       (kw-outer)
    #   acc   = sum_{kh}   rowshift_kh(u[kh]) * rmask_kh
    # pltpu.roll has np.roll semantics (out[q] = in[q - shift]); a source
    # offset of +d therefore needs shift = (-d) % HW.
    u = [None] * KSIZE
    for kw in range(KSIZE):
        dw = kw - PAD
        if dw == 0:
            cs = feats                     # center column tap: no shift, mask is all-ones
        else:
            sh = (-dw) % HW
            cmask = cmask_ref[kw]          # (1, HW), broadcasts over sublanes
            cs = tuple(pltpu.roll(f, sh, axis=1) * cmask for f in feats)
        for kh in range(KSIZE):
            w0 = w_ref[0 * KSIZE * KSIZE + kh * KSIZE + kw]
            w1 = w_ref[1 * KSIZE * KSIZE + kh * KSIZE + kw]
            t = w0 * cs[0] + w1 * cs[1]
            u[kh] = t if u[kh] is None else u[kh] + t

    # Row taps: seed with the center row (no shift, all-ones mask) and fold the
    # BatchNorm shift in for free.
    acc = u[PAD] + shift_ref[0]
    for kh in range(KSIZE):
        dh = kh - PAD
        if dh == 0:
            continue
        sh = (-dh * W) % HW
        acc = acc + pltpu.roll(u[kh], sh, axis=1) * rmask_ref[kh]

    att = jax.nn.sigmoid(acc)                              # (B, HW) f32, EUP
    o_ref[...] = (x * att[:, None, :].astype(x.dtype)).astype(o_ref.dtype)


def spatial_gate(x, conv_w, bn_gamma, bn_beta, bn_mean, bn_var, eps=1e-5):
    """x: (N, C, H, W); conv_w: (1, 2, 7, 7); bn_*: (1,)."""
    N, C, H, W = x.shape
    HW = H * W

    # Fold BatchNorm (inference affine) into the conv weights + a single shift.
    scale = (bn_gamma / jnp.sqrt(bn_var + eps)).astype(jnp.float32)   # (1,)
    shift = (bn_beta - bn_mean * scale).astype(jnp.float32)           # (1,)
    w_fold = (conv_w[0].astype(jnp.float32) * scale[0]).reshape(-1)   # (2*7*7,)

    # Static boundary masks of the flattened (H, W) plane for each conv tap.
    q = jnp.arange(HW, dtype=jnp.int32)
    colq, rowq = q % W, q // W
    offs = jnp.arange(KSIZE, dtype=jnp.int32)[:, None] - PAD          # (7, 1)
    cmask = ((colq[None, :] + offs >= 0) & (colq[None, :] + offs < W))
    rmask = ((rowq[None, :] + offs >= 0) & (rowq[None, :] + offs < H))
    cmask = cmask.astype(jnp.float32).reshape(KSIZE, 1, HW)
    rmask = rmask.astype(jnp.float32).reshape(KSIZE, 1, HW)

    # Lane-dense layout: flatten spatial (free reshape; trailing dim = H*W).
    x_flat = x.reshape(N, C, HW)

    # Batch B images per grid step.  Budget covers double-buffered in/out
    # blocks plus the kernel's f32 intermediates (pooled maps, column-shifted
    # maps, 7 per-row-tap accumulators, attention map) so the step stays well
    # under the smallest default scoped-VMEM limit (16 MiB on v5e) without
    # needing vmem_limit_bytes.
    bytes_per_image = 4 * C * HW * x.dtype.itemsize + (C + 20) * HW * 4
    B = max(1, min(N, (10 << 20) // max(1, bytes_per_image)))
    while N % B:
        B -= 1

    kernel = functools.partial(_spatial_gate_kernel, W=W)
    out = pl.pallas_call(
        kernel,
        out_shape=jax.ShapeDtypeStruct((N, C, HW), x.dtype),
        grid=(N // B,),
        in_specs=[
            pl.BlockSpec(memory_space=pltpu.MemorySpace.SMEM),        # conv w
            pl.BlockSpec(memory_space=pltpu.MemorySpace.SMEM),        # bn shift
            pl.BlockSpec((KSIZE, 1, HW), lambda n: (0, 0, 0)),        # col mask
            pl.BlockSpec((KSIZE, 1, HW), lambda n: (0, 0, 0)),        # row mask
            pl.BlockSpec((B, C, HW), lambda n: (n, 0, 0)),            # x
        ],
        out_specs=pl.BlockSpec((B, C, HW), lambda n: (n, 0, 0)),
        compiler_params=pltpu.CompilerParams(
            dimension_semantics=("parallel",)),
    )(w_fold, shift, cmask, rmask, x_flat)
    return out.reshape(N, C, H, W)


def spatial_gate_reference(x, conv_w, bn_gamma, bn_beta, bn_mean, bn_var,
                           eps=1e-5):
    max_r = jnp.max(x, axis=1, keepdims=True)
    avg_r = jnp.mean(x, axis=1, keepdims=True)
    feat = jnp.concatenate([max_r, avg_r], axis=1)
    out = lax.conv_general_dilated(
        feat, conv_w, window_strides=(1, 1),
        padding=[(PAD, PAD), (PAD, PAD)],
        dimension_numbers=("NCHW", "OIHW", "NCHW"))
    scale = bn_gamma / jnp.sqrt(bn_var + eps)
    shift = bn_beta - bn_mean * scale
    out = out * scale.reshape(1, 1, 1, 1) + shift.reshape(1, 1, 1, 1)
    return x * jax.nn.sigmoid(out)


if __name__ == "__main__":
    key = jax.random.PRNGKey(0)
    kx, kw = jax.random.split(key)

    N, C, H, W = 2, 4, 16, 16
    x = jax.random.normal(kx, (N, C, H, W), dtype=jnp.float32)

    # Deterministic parameter init (synthetic; shapes from Conv2d(2,1,7,bias=False)
    # and BatchNorm2d(1) running stats).
    conv_w = 0.1 * jax.random.normal(kw, (1, 2, KSIZE, KSIZE), dtype=jnp.float32)
    bn_gamma = jnp.ones((1,), jnp.float32)
    bn_beta = jnp.zeros((1,), jnp.float32)
    bn_mean = jnp.zeros((1,), jnp.float32)
    bn_var = jnp.ones((1,), jnp.float32)

    out = spatial_gate(x, conv_w, bn_gamma, bn_beta, bn_mean, bn_var)
    out = jax.block_until_ready(out)

    ref = spatial_gate_reference(x, conv_w, bn_gamma, bn_beta, bn_mean, bn_var)
    assert out.shape == x.shape and out.dtype == x.dtype
    assert jnp.allclose(out, ref, atol=1e-4, rtol=1e-4)

    print("KERNEL_OK")
</pallas_src>

<mosaic_0001>
module attributes {stable_mosaic.version = 11 : i64} {
  func.func @_spatial_gate_kernel(%arg0: i32, %arg1: memref<98xf32, #tpu.memory_space<smem>>, %arg2: memref<1xf32, #tpu.memory_space<smem>>, %arg3: memref<7x1x256xf32, #tpu.memory_space<vmem>>, %arg4: memref<7x1x256xf32, #tpu.memory_space<vmem>>, %arg5: memref<2x4x256xf32, #tpu.memory_space<vmem>>, %arg6: memref<2x4x256xf32, #tpu.memory_space<vmem>>) attributes {dimension_semantics = [#tpu.dimension_semantics<parallel>], iteration_bounds = array<i64: 1>, scalar_prefetch = 0 : i64, scratch_operands = 0 : i64, tpu.core_type = #tpu.core_type<tc>, window_params = [{transform_indices = @transform_0, window_bounds = array<i64: 98>}, {transform_indices = @transform_1, window_bounds = array<i64: 1>}, {pipeline_mode = #tpu.pipeline_mode<synchronous>, transform_indices = @transform_2, window_bounds = array<i64: 7, 1, 256>}, {pipeline_mode = #tpu.pipeline_mode<synchronous>, transform_indices = @transform_3, window_bounds = array<i64: 7, 1, 256>}, {transform_indices = @transform_4, window_bounds = array<i64: 2, 4, 256>}, {transform_indices = @transform_5, window_bounds = array<i64: 2, 4, 256>}]} {
    %c0 = arith.constant 0 : index
    %c0_0 = arith.constant 0 : index
    %c0_1 = arith.constant 0 : index
    %0 = vector.load %arg5[%c0, %c0_0, %c0_1] : memref<2x4x256xf32, #tpu.memory_space<vmem>>, vector<2x4x256xf32>
    %cst = arith.constant dense<0xFF800000> : vector<2x256xf32>
    %1 = vector.multi_reduction <maximumf>, %0, %cst [1] : vector<2x4x256xf32> to vector<2x256xf32>
    %cst_2 = arith.constant dense<0.000000e+00> : vector<2x256xf32>
    %2 = vector.multi_reduction <add>, %0, %cst_2 [1] : vector<2x4x256xf32> to vector<2x256xf32>
    %cst_3 = arith.constant 2.500000e-01 : f32
    %3 = vector.broadcast %cst_3 : f32 to vector<2x256xf32>
    %4 = arith.mulf %2, %3 : vector<2x256xf32>
    %c0_4 = arith.constant 0 : index
    %c0_5 = arith.constant 0 : index
    %c0_6 = arith.constant 0 : index
    %5 = vector.load %arg3[%c0_4, %c0_5, %c0_6] : memref<7x1x256xf32, #tpu.memory_space<vmem>>, vector<1x1x256xf32>
    %6 = vector.shape_cast %5 : vector<1x1x256xf32> to vector<1x256xf32>
    %c3_i32 = arith.constant 3 : i32
    %7 = tpu.dynamic_rotate %1 by %c3_i32 dim 1 : vector<2x256xf32>, i32 -> vector<2x256xf32>
    %8 = vector.broadcast %6 : vector<1x256xf32> to vector<2x256xf32>
    %9 = arith.mulf %7, %8 : vector<2x256xf32>
    %c3_i32_7 = arith.constant 3 : i32
    %10 = tpu.dynamic_rotate %4 by %c3_i32_7 dim 1 : vector<2x256xf32>, i32 -> vector<2x256xf32>
    %11 = vector.broadcast %6 : vector<1x256xf32> to vector<2x256xf32>
    %12 = arith.mulf %10, %11 : vector<2x256xf32>
    %c0_8 = arith.constant 0 : index
    %13 = memref.load %arg1[%c0_8] : memref<98xf32, #tpu.memory_space<smem>>
    %c49 = arith.constant 49 : index
    %14 = memref.load %arg1[%c49] : memref<98xf32, #tpu.memory_space<smem>>
    %15 = vector.broadcast %13 : f32 to vector<2x256xf32>
    %16 = arith.mulf %15, %9 : vector<2x256xf32>
    %17 = vector.broadcast %14 : f32 to vector<2x256xf32>
    %18 = arith.mulf %17, %12 : vector<2x256xf32>
    %19 = arith.addf %16, %18 : vector<2x256xf32>
    %c7 = arith.constant 7 : index
    %20 = memref.load %arg1[%c7] : memref<98xf32, #tpu.memory_space<smem>>
    %c56 = arith.constant 56 : index
    %21 = memref.load %arg1[%c56] : memref<98xf32, #tpu.memory_space<smem>>
    %22 = vector.broadcast %20 : f32 to vector<2x256xf32>
    %23 = arith.mulf %22, %9 : vector<2x256xf32>
    %24 = vector.broadcast %21 : f32 to vector<2x256xf32>
    %25 = arith.mulf %24, %12 : vector<2x256xf32>
    %26 = arith.addf %23, %25 : vector<2x256xf32>
    %c14 = arith.constant 14 : index
    %27 = memref.load %arg1[%c14] : memref<98xf32, #tpu.memory_space<smem>>
    %c63 = arith.constant 63 : index
    %28 = memref.load %arg1[%c63] : memref<98xf32, #tpu.memory_space<smem>>
    %29 = vector.broadcast %27 : f32 to vector<2x256xf32>
    %30 = arith.mulf %29, %9 : vector<2x256xf32>
    %31 = vector.broadcast %28 : f32 to vector<2x256xf32>
    %32 = arith.mulf %31, %12 : vector<2x256xf32>
    %33 = arith.addf %30, %32 : vector<2x256xf32>
    %c21 = arith.constant 21 : index
    %34 = memref.load %arg1[%c21] : memref<98xf32, #tpu.memory_space<smem>>
    %c70 = arith.constant 70 : index
    %35 = memref.load %arg1[%c70] : memref<98xf32, #tpu.memory_space<smem>>
    %36 = vector.broadcast %34 : f32 to vector<2x256xf32>
    %37 = arith.mulf %36, %9 : vector<2x256xf32>
    %38 = vector.broadcast %35 : f32 to vector<2x256xf32>
    %39 = arith.mulf %38, %12 : vector<2x256xf32>
    %40 = arith.addf %37, %39 : vector<2x256xf32>
    %c28 = arith.constant 28 : index
    %41 = memref.load %arg1[%c28] : memref<98xf32, #tpu.memory_space<smem>>
    %c77 = arith.constant 77 : index
    %42 = memref.load %arg1[%c77] : memref<98xf32, #tpu.memory_space<smem>>
    %43 = vector.broadcast %41 : f32 to vector<2x256xf32>
    %44 = arith.mulf %43, %9 : vector<2x256xf32>
    %45 = vector.broadcast %42 : f32 to vector<2x256xf32>
    %46 = arith.mulf %45, %12 : vector<2x256xf32>
    %47 = arith.addf %44, %46 : vector<2x256xf32>
    %c35 = arith.constant 35 : index
    %48 = memref.load %arg1[%c35] : memref<98xf32, #tpu.memory_space<smem>>
    %c84 = arith.constant 84 : index
    %49 = memref.load %arg1[%c84] : memref<98xf32, #tpu.memory_space<smem>>
    %50 = vector.broadcast %48 : f32 to vector<2x256xf32>
    %51 = arith.mulf %50, %9 : vector<2x256xf32>
    %52 = vector.broadcast %49 : f32 to vector<2x256xf32>
    %53 = arith.mulf %52, %12 : vector<2x256xf32>
    %54 = arith.addf %51, %53 : vector<2x256xf32>
    %c42 = arith.constant 42 : index
    %55 = memref.load %arg1[%c42] : memref<98xf32, #tpu.memory_space<smem>>
    %c91 = arith.constant 91 : index
    %56 = memref.load %arg1[%c91] : memref<98xf32, #tpu.memory_space<smem>>
    %57 = vector.broadcast %55 : f32 to vector<2x256xf32>
    %58 = arith.mulf %57, %9 : vector<2x256xf32>
    %59 = vector.broadcast %56 : f32 to vector<2x256xf32>
    %60 = arith.mulf %59, %12 : vector<2x256xf32>
    %61 = arith.addf %58, %60 : vector<2x256xf32>
    %c1 = arith.constant 1 : index
    %c0_9 = arith.constant 0 : index
    %c0_10 = arith.constant 0 : index
    %62 = vector.load %arg3[%c1, %c0_9, %c0_10] : memref<7x1x256xf32, #tpu.memory_space<vmem>>, vector<1x1x256xf32>
    %63 = vector.shape_cast %62 : vector<1x1x256xf32> to vector<1x256xf32>
    %c2_i32 = arith.constant 2 : i32
    %64 = tpu.dynamic_rotate %1 by %c2_i32 dim 1 : vector<2x256xf32>, i32 -> vector<2x256xf32>
    %65 = vector.broadcast %63 : vector<1x256xf32> to vector<2x256xf32>
    %66 = arith.mulf %64, %65 : vector<2x256xf32>
    %c2_i32_11 = arith.constant 2 : i32
    %67 = tpu.dynamic_rotate %4 by %c2_i32_11 dim 1 : vector<2x256xf32>, i32 -> vector<2x256xf32>
    %68 = vector.broadcast %63 : vector<1x256xf32> to vector<2x256xf32>
    %69 = arith.mulf %67, %68 : vector<2x256xf32>
    %c1_12 = arith.constant 1 : index
    %70 = memref.load %arg1[%c1_12] : memref<98xf32, #tpu.memory_space<smem>>
    %c50 = arith.constant 50 : index
    %71 = memref.load %arg1[%c50] : memref<98xf32, #tpu.memory_space<smem>>
    %72 = vector.broadcast %70 : f32 to vector<2x256xf32>
    %73 = arith.mulf %72, %66 : vector<2x256xf32>
    %74 = vector.broadcast %71 : f32 to vector<2x256xf32>
    %75 = arith.mulf %74, %69 : vector<2x256xf32>
    %76 = arith.addf %73, %75 : vector<2x256xf32>
    %77 = arith.addf %19, %76 : vector<2x256xf32>
    %c8 = arith.constant 8 : index
    %78 = memref.load %arg1[%c8] : memref<98xf32, #tpu.memory_space<smem>>
    %c57 = arith.constant 57 : index
    %79 = memref.load %arg1[%c57] : memref<98xf32, #tpu.memory_space<smem>>
    %80 = vector.broadcast %78 : f32 to vector<2x256xf32>
    %81 = arith.mulf %80, %66 : vector<2x256xf32>
    %82 = vector.broadcast %79 : f32 to vector<2x256xf32>
    %83 = arith.mulf %82, %69 : vector<2x256xf32>
    %84 = arith.addf %81, %83 : vector<2x256xf32>
    %85 = arith.addf %26, %84 : vector<2x256xf32>
    %c15 = arith.constant 15 : index
    %86 = memref.load %arg1[%c15] : memref<98xf32, #tpu.memory_space<smem>>
    %c64 = arith.constant 64 : index
    %87 = memref.load %arg1[%c64] : memref<98xf32, #tpu.memory_space<smem>>
    %88 = vector.broadcast %86 : f32 to vector<2x256xf32>
    %89 = arith.mulf %88, %66 : vector<2x256xf32>
    %90 = vector.broadcast %87 : f32 to vector<2x256xf32>
    %91 = arith.mulf %90, %69 : vector<2x256xf32>
    %92 = arith.addf %89, %91 : vector<2x256xf32>
    %93 = arith.addf %33, %92 : vector<2x256xf32>
    %c22 = arith.constant 22 : index
    %94 = memref.load %arg1[%c22] : memref<98xf32, #tpu.memory_space<smem>>
    %c71 = arith.constant 71 : index
    %95 = memref.load %arg1[%c71] : memref<98xf32, #tpu.memory_space<smem>>
    %96 = vector.broadcast %94 : f32 to vector<2x256xf32>
    %97 = arith.mulf %96, %66 : vector<2x256xf32>
    %98 = vector.broadcast %95 : f32 to vector<2x256xf32>
    %99 = arith.mulf %98, %69 : vector<2x256xf32>
    %100 = arith.addf %97, %99 : vector<2x256xf32>
    %101 = arith.addf %40, %100 : vector<2x256xf32>
    %c29 = arith.constant 29 : index
    %102 = memref.load %arg1[%c29] : memref<98xf32, #tpu.memory_space<smem>>
    %c78 = arith.constant 78 : index
    %103 = memref.load %arg1[%c78] : memref<98xf32, #tpu.memory_space<smem>>
    %104 = vector.broadcast %102 : f32 to vector<2x256xf32>
    %105 = arith.mulf %104, %66 : vector<2x256xf32>
    %106 = vector.broadcast %103 : f32 to vector<2x256xf32>
    %107 = arith.mulf %106, %69 : vector<2x256xf32>
    %108 = arith.addf %105, %107 : vector<2x256xf32>
    %109 = arith.addf %47, %108 : vector<2x256xf32>
    %c36 = arith.constant 36 : index
    %110 = memref.load %arg1[%c36] : memref<98xf32, #tpu.memory_space<smem>>
    %c85 = arith.constant 85 : index
    %111 = memref.load %arg1[%c85] : memref<98xf32, #tpu.memory_space<smem>>
    %112 = vector.broadcast %110 : f32 to vector<2x256xf32>
    %113 = arith.mulf %112, %66 : vector<2x256xf32>
    %114 = vector.broadcast %111 : f32 to vector<2x256xf32>
    %115 = arith.mulf %114, %69 : vector<2x256xf32>
    %116 = arith.addf %113, %115 : vector<2x256xf32>
    %117 = arith.addf %54, %116 : vector<2x256xf32>
    %c43 = arith.constant 43 : index
    %118 = memref.load %arg1[%c43] : memref<98xf32, #tpu.memory_space<smem>>
    %c92 = arith.constant 92 : index
    %119 = memref.load %arg1[%c92] : memref<98xf32, #tpu.memory_space<smem>>
    %120 = vector.broadcast %118 : f32 to vector<2x256xf32>
    %121 = arith.mulf %120, %66 : vector<2x256xf32>
    %122 = vector.broadcast %119 : f32 to vector<2x256xf32>
    %123 = arith.mulf %122, %69 : vector<2x256xf32>
    %124 = arith.addf %121, %123 : vector<2x256xf32>
    %125 = arith.addf %61, %124 : vector<2x256xf32>
    %c2 = arith.constant 2 : index
    %c0_13 = arith.constant 0 : index
    %c0_14 = arith.constant 0 : index
    %126 = vector.load %arg3[%c2, %c0_13, %c0_14] : memref<7x1x256xf32, #tpu.memory_space<vmem>>, vector<1x1x256xf32>
    %127 = vector.shape_cast %126 : vector<1x1x256xf32> to vector<1x256xf32>
    %c1_i32 = arith.constant 1 : i32
    %128 = tpu.dynamic_rotate %1 by %c1_i32 dim 1 : vector<2x256xf32>, i32 -> vector<2x256xf32>
    %129 = vector.broadcast %127 : vector<1x256xf32> to vector<2x256xf32>
    %130 = arith.mulf %128, %129 : vector<2x256xf32>
    %c1_i32_15 = arith.constant 1 : i32
    %131 = tpu.dynamic_rotate %4 by %c1_i32_15 dim 1 : vector<2x256xf32>, i32 -> vector<2x256xf32>
    %132 = vector.broadcast %127 : vector<1x256xf32> to vector<2x256xf32>
    %133 = arith.mulf %131, %132 : vector<2x256xf32>
    %c2_16 = arith.constant 2 : index
    %134 = memref.load %arg1[%c2_16] : memref<98xf32, #tpu.memory_space<smem>>
    %c51 = arith.constant 51 : index
    %135 = memref.load %arg1[%c51] : memref<98xf32, #tpu.memory_space<smem>>
    %136 = vector.broadcast %134 : f32 to vector<2x256xf32>
    %137 = arith.mulf %136, %130 : vector<2x256xf32>
    %138 = vector.broadcast %135 : f32 to vector<2x256xf32>
    %139 = arith.mulf %138, %133 : vector<2x256xf32>
    %140 = arith.addf %137, %139 : vector<2x256xf32>
    %141 = arith.addf %77, %140 : vector<2x256xf32>
    %c9 = arith.constant 9 : index
    %142 = memref.load %arg1[%c9] : memref<98xf32, #tpu.memory_space<smem>>
    %c58 = arith.constant 58 : index
    %143 = memref.load %arg1[%c58] : memref<98xf32, #tpu.memory_space<smem>>
    %144 = vector.broadcast %142 : f32 to vector<2x256xf32>
    %145 = arith.mulf %144, %130 : vector<2x256xf32>
    %146 = vector.broadcast %143 : f32 to vector<2x256xf32>
    %147 = arith.mulf %146, %133 : vector<2x256xf32>
    %148 = arith.addf %145, %147 : vector<2x256xf32>
    %149 = arith.addf %85, %148 : vector<2x256xf32>
    %c16 = arith.constant 16 : index
    %150 = memref.load %arg1[%c16] : memref<98xf32, #tpu.memory_space<smem>>
    %c65 = arith.constant 65 : index
    %151 = memref.load %arg1[%c65] : memref<98xf32, #tpu.memory_space<smem>>
    %152 = vector.broadcast %150 : f32 to vector<2x256xf32>
    %153 = arith.mulf %152, %130 : vector<2x256xf32>
    %154 = vector.broadcast %151 : f32 to vector<2x256xf32>
    %155 = arith.mulf %154, %133 : vector<2x256xf32>
    %156 = arith.addf %153, %155 : vector<2x256xf32>
    %157 = arith.addf %93, %156 : vector<2x256xf32>
    %c23 = arith.constant 23 : index
    %158 = memref.load %arg1[%c23] : memref<98xf32, #tpu.memory_space<smem>>
    %c72 = arith.constant 72 : index
    %159 = memref.load %arg1[%c72] : memref<98xf32, #tpu.memory_space<smem>>
    %160 = vector.broadcast %158 : f32 to vector<2x256xf32>
    %161 = arith.mulf %160, %130 : vector<2x256xf32>
    %162 = vector.broadcast %159 : f32 to vector<2x256xf32>
    %163 = arith.mulf %162, %133 : vector<2x256xf32>
    %164 = arith.addf %161, %163 : vector<2x256xf32>
    %165 = arith.addf %101, %164 : vector<2x256xf32>
    %c30 = arith.constant 30 : index
    %166 = memref.load %arg1[%c30] : memref<98xf32, #tpu.memory_space<smem>>
    %c79 = arith.constant 79 : index
    %167 = memref.load %arg1[%c79] : memref<98xf32, #tpu.memory_space<smem>>
    %168 = vector.broadcast %166 : f32 to vector<2x256xf32>
    %169 = arith.mulf %168, %130 : vector<2x256xf32>
    %170 = vector.broadcast %167 : f32 to vector<2x256xf32>
    %171 = arith.mulf %170, %133 : vector<2x256xf32>
    %172 = arith.addf %169, %171 : vector<2x256xf32>
    %173 = arith.addf %109, %172 : vector<2x256xf32>
    %c37 = arith.constant 37 : index
    %174 = memref.load %arg1[%c37] : memref<98xf32, #tpu.memory_space<smem>>
    %c86 = arith.constant 86 : index
    %175 = memref.load %arg1[%c86] : memref<98xf32, #tpu.memory_space<smem>>
    %176 = vector.broadcast %174 : f32 to vector<2x256xf32>
    %177 = arith.mulf %176, %130 : vector<2x256xf32>
    %178 = vector.broadcast %175 : f32 to vector<2x256xf32>
    %179 = arith.mulf %178, %133 : vector<2x256xf32>
    %180 = arith.addf %177, %179 : vector<2x256xf32>
    %181 = arith.addf %117, %180 : vector<2x256xf32>
    %c44 = arith.constant 44 : index
    %182 = memref.load %arg1[%c44] : memref<98xf32, #tpu.memory_space<smem>>
    %c93 = arith.constant 93 : index
    %183 = memref.load %arg1[%c93] : memref<98xf32, #tpu.memory_space<smem>>
    %184 = vector.broadcast %182 : f32 to vector<2x256xf32>
    %185 = arith.mulf %184, %130 : vector<2x256xf32>
    %186 = vector.broadcast %183 : f32 to vector<2x256xf32>
    %187 = arith.mulf %186, %133 : vector<2x256xf32>
    %188 = arith.addf %185, %187 : vector<2x256xf32>
    %189 = arith.addf %125, %188 : vector<2x256xf32>
    %c3 = arith.constant 3 : index
    %190 = memref.load %arg1[%c3] : memref<98xf32, #tpu.memory_space<smem>>
    %c52 = arith.constant 52 : index
    %191 = memref.load %arg1[%c52] : memref<98xf32, #tpu.memory_space<smem>>
    %192 = vector.broadcast %190 : f32 to vector<2x256xf32>
    %193 = arith.mulf %192, %1 : vector<2x256xf32>
    %194 = vector.broadcast %191 : f32 to vector<2x256xf32>
    %195 = arith.mulf %194, %4 : vector<2x256xf32>
    %196 = arith.addf %193, %195 : vector<2x256xf32>
    %197 = arith.addf %141, %196 : vector<2x256xf32>
    %c10 = arith.constant 10 : index
    %198 = memref.load %arg1[%c10] : memref<98xf32, #tpu.memory_space<smem>>
    %c59 = arith.constant 59 : index
    %199 = memref.load %arg1[%c59] : memref<98xf32, #tpu.memory_space<smem>>
    %200 = vector.broadcast %198 : f32 to vector<2x256xf32>
    %201 = arith.mulf %200, %1 : vector<2x256xf32>
    %202 = vector.broadcast %199 : f32 to vector<2x256xf32>
    %203 = arith.mulf %202, %4 : vector<2x256xf32>
    %204 = arith.addf %201, %203 : vector<2x256xf32>
    %205 = arith.addf %149, %204 : vector<2x256xf32>
    %c17 = arith.constant 17 : index
    %206 = memref.load %arg1[%c17] : memref<98xf32, #tpu.memory_space<smem>>
    %c66 = arith.constant 66 : index
    %207 = memref.load %arg1[%c66] : memref<98xf32, #tpu.memory_space<smem>>
    %208 = vector.broadcast %206 : f32 to vector<2x256xf32>
    %209 = arith.mulf %208, %1 : vector<2x256xf32>
    %210 = vector.broadcast %207 : f32 to vector<2x256xf32>
    %211 = arith.mulf %210, %4 : vector<2x256xf32>
    %212 = arith.addf %209, %211 : vector<2x256xf32>
    %213 = arith.addf %157, %212 : vector<2x256xf32>
    %c24 = arith.constant 24 : index
    %214 = memref.load %arg1[%c24] : memref<98xf32, #tpu.memory_space<smem>>
    %c73 = arith.constant 73 : index
    %215 = memref.load %arg1[%c73] : memref<98xf32, #tpu.memory_space<smem>>
    %216 = vector.broadcast %214 : f32 to vector<2x256xf32>
    %217 = arith.mulf %216, %1 : vector<2x256xf32>
    %218 = vector.broadcast %215 : f32 to vector<2x256xf32>
    %219 = arith.mulf %218, %4 : vector<2x256xf32>
    %220 = arith.addf %217, %219 : vector<2x256xf32>
    %221 = arith.addf %165, %220 : vector<2x256xf32>
    %c31 = arith.constant 31 : index
    %222 = memref.load %arg1[%c31] : memref<98xf32, #tpu.memory_space<smem>>
    %c80 = arith.constant 80 : index
    %223 = memref.load %arg1[%c80] : memref<98xf32, #tpu.memory_space<smem>>
    %224 = vector.broadcast %222 : f32 to vector<2x256xf32>
    %225 = arith.mulf %224, %1 : vector<2x256xf32>
    %226 = vector.broadcast %223 : f32 to vector<2x256xf32>
    %227 = arith.mulf %226, %4 : vector<2x256xf32>
    %228 = arith.addf %225, %227 : vector<2x256xf32>
    %229 = arith.addf %173, %228 : vector<2x256xf32>
    %c38 = arith.constant 38 : index
    %230 = memref.load %arg1[%c38] : memref<98xf32, #tpu.memory_space<smem>>
    %c87 = arith.constant 87 : index
    %231 = memref.load %arg1[%c87] : memref<98xf32, #tpu.memory_space<smem>>
    %232 = vector.broadcast %230 : f32 to vector<2x256xf32>
    %233 = arith.mulf %232, %1 : vector<2x256xf32>
    %234 = vector.broadcast %231 : f32 to vector<2x256xf32>
    %235 = arith.mulf %234, %4 : vector<2x256xf32>
    %236 = arith.addf %233, %235 : vector<2x256xf32>
    %237 = arith.addf %181, %236 : vector<2x256xf32>
    %c45 = arith.constant 45 : index
    %238 = memref.load %arg1[%c45] : memref<98xf32, #tpu.memory_space<smem>>
    %c94 = arith.constant 94 : index
    %239 = memref.load %arg1[%c94] : memref<98xf32, #tpu.memory_space<smem>>
    %240 = vector.broadcast %238 : f32 to vector<2x256xf32>
    %241 = arith.mulf %240, %1 : vector<2x256xf32>
    %242 = vector.broadcast %239 : f32 to vector<2x256xf32>
    %243 = arith.mulf %242, %4 : vector<2x256xf32>
    %244 = arith.addf %241, %243 : vector<2x256xf32>
    %245 = arith.addf %189, %244 : vector<2x256xf32>
    %c4 = arith.constant 4 : index
    %c0_17 = arith.constant 0 : index
    %c0_18 = arith.constant 0 : index
    %246 = vector.load %arg3[%c4, %c0_17, %c0_18] : memref<7x1x256xf32, #tpu.memory_space<vmem>>, vector<1x1x256xf32>
    %247 = vector.shape_cast %246 : vector<1x1x256xf32> to vector<1x256xf32>
    %c255_i32 = arith.constant 255 : i32
    %248 = tpu.dynamic_rotate %1 by %c255_i32 dim 1 : vector<2x256xf32>, i32 -> vector<2x256xf32>
    %249 = vector.broadcast %247 : vector<1x256xf32> to vector<2x256xf32>
    %250 = arith.mulf %248, %249 : vector<2x256xf32>
    %c255_i32_19 = arith.constant 255 : i32
    %251 = tpu.dynamic_rotate %4 by %c255_i32_19 dim 1 : vector<2x256xf32>, i32 -> vector<2x256xf32>
    %252 = vector.broadcast %247 : vector<1x256xf32> to vector<2x256xf32>
    %253 = arith.mulf %251, %252 : vector<2x256xf32>
    %c4_20 = arith.constant 4 : index
    %254 = memref.load %arg1[%c4_20] : memref<98xf32, #tpu.memory_space<smem>>
    %c53 = arith.constant 53 : index
    %255 = memref.load %arg1[%c53] : memref<98xf32, #tpu.memory_space<smem>>
    %256 = vector.broadcast %254 : f32 to vector<2x256xf32>
    %257 = arith.mulf %256, %250 : vector<2x256xf32>
    %258 = vector.broadcast %255 : f32 to vector<2x256xf32>
    %259 = arith.mulf %258, %253 : vector<2x256xf32>
    %260 = arith.addf %257, %259 : vector<2x256xf32>
    %261 = arith.addf %197, %260 : vector<2x256xf32>
    %c11 = arith.constant 11 : index
    %262 = memref.load %arg1[%c11] : memref<98xf32, #tpu.memory_space<smem>>
    %c60 = arith.constant 60 : index
    %263 = memref.load %arg1[%c60] : memref<98xf32, #tpu.memory_space<smem>>
    %264 = vector.broadcast %262 : f32 to vector<2x256xf32>
    %265 = arith.mulf %264, %250 : vector<2x256xf32>
    %266 = vector.broadcast %263 : f32 to vector<2x256xf32>
    %267 = arith.mulf %266, %253 : vector<2x256xf32>
    %268 = arith.addf %265, %267 : vector<2x256xf32>
    %269 = arith.addf %205, %268 : vector<2x256xf32>
    %c18 = arith.constant 18 : index
    %270 = memref.load %arg1[%c18] : memref<98xf32, #tpu.memory_space<smem>>
    %c67 = arith.constant 67 : index
    %271 = memref.load %arg1[%c67] : memref<98xf32, #tpu.memory_space<smem>>
    %272 = vector.broadcast %270 : f32 to vector<2x256xf32>
    %273 = arith.mulf %272, %250 : vector<2x256xf32>
    %274 = vector.broadcast %271 : f32 to vector<2x256xf32>
    %275 = arith.mulf %274, %253 : vector<2x256xf32>
    %276 = arith.addf %273, %275 : vector<2x256xf32>
    %277 = arith.addf %213, %276 : vector<2x256xf32>
    %c25 = arith.constant 25 : index
    %278 = memref.load %arg1[%c25] : memref<98xf32, #tpu.memory_space<smem>>
    %c74 = arith.constant 74 : index
    %279 = memref.load %arg1[%c74] : memref<98xf32, #tpu.memory_space<smem>>
    %280 = vector.broadcast %278 : f32 to vector<2x256xf32>
    %281 = arith.mulf %280, %250 : vector<2x256xf32>
    %282 = vector.broadcast %279 : f32 to vector<2x256xf32>
    %283 = arith.mulf %282, %253 : vector<2x256xf32>
    %284 = arith.addf %281, %283 : vector<2x256xf32>
    %285 = arith.addf %221, %284 : vector<2x256xf32>
    %c32 = arith.constant 32 : index
    %286 = memref.load %arg1[%c32] : memref<98xf32, #tpu.memory_space<smem>>
    %c81 = arith.constant 81 : index
    %287 = memref.load %arg1[%c81] : memref<98xf32, #tpu.memory_space<smem>>
    %288 = vector.broadcast %286 : f32 to vector<2x256xf32>
    %289 = arith.mulf %288, %250 : vector<2x256xf32>
    %290 = vector.broadcast %287 : f32 to vector<2x256xf32>
    %291 = arith.mulf %290, %253 : vector<2x256xf32>
    %292 = arith.addf %289, %291 : vector<2x256xf32>
    %293 = arith.addf %229, %292 : vector<2x256xf32>
    %c39 = arith.constant 39 : index
    %294 = memref.load %arg1[%c39] : memref<98xf32, #tpu.memory_space<smem>>
    %c88 = arith.constant 88 : index
    %295 = memref.load %arg1[%c88] : memref<98xf32, #tpu.memory_space<smem>>
    %296 = vector.broadcast %294 : f32 to vector<2x256xf32>
    %297 = arith.mulf %296, %250 : vector<2x256xf32>
    %298 = vector.broadcast %295 : f32 to vector<2x256xf32>
    %299 = arith.mulf %298, %253 : vector<2x256xf32>
    %300 = arith.addf %297, %299 : vector<2x256xf32>
    %301 = arith.addf %237, %300 : vector<2x256xf32>
    %c46 = arith.constant 46 : index
    %302 = memref.load %arg1[%c46] : memref<98xf32, #tpu.memory_space<smem>>
    %c95 = arith.constant 95 : index
    %303 = memref.load %arg1[%c95] : memref<98xf32, #tpu.memory_space<smem>>
    %304 = vector.broadcast %302 : f32 to vector<2x256xf32>
    %305 = arith.mulf %304, %250 : vector<2x256xf32>
    %306 = vector.broadcast %303 : f32 to vector<2x256xf32>
    %307 = arith.mulf %306, %253 : vector<2x256xf32>
    %308 = arith.addf %305, %307 : vector<2x256xf32>
    %309 = arith.addf %245, %308 : vector<2x256xf32>
    %c5 = arith.constant 5 : index
    %c0_21 = arith.constant 0 : index
    %c0_22 = arith.constant 0 : index
    %310 = vector.load %arg3[%c5, %c0_21, %c0_22] : memref<7x1x256xf32, #tpu.memory_space<vmem>>, vector<1x1x256xf32>
    %311 = vector.shape_cast %310 : vector<1x1x256xf32> to vector<1x256xf32>
    %c254_i32 = arith.constant 254 : i32
    %312 = tpu.dynamic_rotate %1 by %c254_i32 dim 1 : vector<2x256xf32>, i32 -> vector<2x256xf32>
    %313 = vector.broadcast %311 : vector<1x256xf32> to vector<2x256xf32>
    %314 = arith.mulf %312, %313 : vector<2x256xf32>
    %c254_i32_23 = arith.constant 254 : i32
    %315 = tpu.dynamic_rotate %4 by %c254_i32_23 dim 1 : vector<2x256xf32>, i32 -> vector<2x256xf32>
    %316 = vector.broadcast %311 : vector<1x256xf32> to vector<2x256xf32>
    %317 = arith.mulf %315, %316 : vector<2x256xf32>
    %c5_24 = arith.constant 5 : index
    %318 = memref.load %arg1[%c5_24] : memref<98xf32, #tpu.memory_space<smem>>
    %c54 = arith.constant 54 : index
    %319 = memref.load %arg1[%c54] : memref<98xf32, #tpu.memory_space<smem>>
    %320 = vector.broadcast %318 : f32 to vector<2x256xf32>
    %321 = arith.mulf %320, %314 : vector<2x256xf32>
    %322 = vector.broadcast %319 : f32 to vector<2x256xf32>
    %323 = arith.mulf %322, %317 : vector<2x256xf32>
    %324 = arith.addf %321, %323 : vector<2x256xf32>
    %325 = arith.addf %261, %324 : vector<2x256xf32>
    %c12 = arith.constant 12 : index
    %326 = memref.load %arg1[%c12] : memref<98xf32, #tpu.memory_space<smem>>
    %c61 = arith.constant 61 : index
    %327 = memref.load %arg1[%c61] : memref<98xf32, #tpu.memory_space<smem>>
    %328 = vector.broadcast %326 : f32 to vector<2x256xf32>
    %329 = arith.mulf %328, %314 : vector<2x256xf32>
    %330 = vector.broadcast %327 : f32 to vector<2x256xf32>
    %331 = arith.mulf %330, %317 : vector<2x256xf32>
    %332 = arith.addf %329, %331 : vector<2x256xf32>
    %333 = arith.addf %269, %332 : vector<2x256xf32>
    %c19 = arith.constant 19 : index
    %334 = memref.load %arg1[%c19] : memref<98xf32, #tpu.memory_space<smem>>
    %c68 = arith.constant 68 : index
    %335 = memref.load %arg1[%c68] : memref<98xf32, #tpu.memory_space<smem>>
    %336 = vector.broadcast %334 : f32 to vector<2x256xf32>
    %337 = arith.mulf %336, %314 : vector<2x256xf32>
    %338 = vector.broadcast %335 : f32 to vector<2x256xf32>
    %339 = arith.mulf %338, %317 : vector<2x256xf32>
    %340 = arith.addf %337, %339 : vector<2x256xf32>
    %341 = arith.addf %277, %340 : vector<2x256xf32>
    %c26 = arith.constant 26 : index
    %342 = memref.load %arg1[%c26] : memref<98xf32, #tpu.memory_space<smem>>
    %c75 = arith.constant 75 : index
    %343 = memref.load %arg1[%c75] : memref<98xf32, #tpu.memory_space<smem>>
    %344 = vector.broadcast %342 : f32 to vector<2x256xf32>
    %345 = arith.mulf %344, %314 : vector<2x256xf32>
    %346 = vector.broadcast %343 : f32 to vector<2x256xf32>
    %347 = arith.mulf %346, %317 : vector<2x256xf32>
    %348 = arith.addf %345, %347 : vector<2x256xf32>
    %349 = arith.addf %285, %348 : vector<2x256xf32>
    %c33 = arith.constant 33 : index
    %350 = memref.load %arg1[%c33] : memref<98xf32, #tpu.memory_space<smem>>
    %c82 = arith.constant 82 : index
    %351 = memref.load %arg1[%c82] : memref<98xf32, #tpu.memory_space<smem>>
    %352 = vector.broadcast %350 : f32 to vector<2x256xf32>
    %353 = arith.mulf %352, %314 : vector<2x256xf32>
    %354 = vector.broadcast %351 : f32 to vector<2x256xf32>
    %355 = arith.mulf %354, %317 : vector<2x256xf32>
    %356 = arith.addf %353, %355 : vector<2x256xf32>
    %357 = arith.addf %293, %356 : vector<2x256xf32>
    %c40 = arith.constant 40 : index
    %358 = memref.load %arg1[%c40] : memref<98xf32, #tpu.memory_space<smem>>
    %c89 = arith.constant 89 : index
    %359 = memref.load %arg1[%c89] : memref<98xf32, #tpu.memory_space<smem>>
    %360 = vector.broadcast %358 : f32 to vector<2x256xf32>
    %361 = arith.mulf %360, %314 : vector<2x256xf32>
    %362 = vector.broadcast %359 : f32 to vector<2x256xf32>
    %363 = arith.mulf %362, %317 : vector<2x256xf32>
    %364 = arith.addf %361, %363 : vector<2x256xf32>
    %365 = arith.addf %301, %364 : vector<2x256xf32>
    %c47 = arith.constant 47 : index
    %366 = memref.load %arg1[%c47] : memref<98xf32, #tpu.memory_space<smem>>
    %c96 = arith.constant 96 : index
    %367 = memref.load %arg1[%c96] : memref<98xf32, #tpu.memory_space<smem>>
    %368 = vector.broadcast %366 : f32 to vector<2x256xf32>
    %369 = arith.mulf %368, %314 : vector<2x256xf32>
    %370 = vector.broadcast %367 : f32 to vector<2x256xf32>
    %371 = arith.mulf %370, %317 : vector<2x256xf32>
    %372 = arith.addf %369, %371 : vector<2x256xf32>
    %373 = arith.addf %309, %372 : vector<2x256xf32>
    %c6 = arith.constant 6 : index
    %c0_25 = arith.constant 0 : index
    %c0_26 = arith.constant 0 : index
    %374 = vector.load %arg3[%c6, %c0_25, %c0_26] : memref<7x1x256xf32, #tpu.memory_space<vmem>>, vector<1x1x256xf32>
    %375 = vector.shape_cast %374 : vector<1x1x256xf32> to vector<1x256xf32>
    %c253_i32 = arith.constant 253 : i32
    %376 = tpu.dynamic_rotate %1 by %c253_i32 dim 1 : vector<2x256xf32>, i32 -> vector<2x256xf32>
    %377 = vector.broadcast %375 : vector<1x256xf32> to vector<2x256xf32>
    %378 = arith.mulf %376, %377 : vector<2x256xf32>
    %c253_i32_27 = arith.constant 253 : i32
    %379 = tpu.dynamic_rotate %4 by %c253_i32_27 dim 1 : vector<2x256xf32>, i32 -> vector<2x256xf32>
    %380 = vector.broadcast %375 : vector<1x256xf32> to vector<2x256xf32>
    %381 = arith.mulf %379, %380 : vector<2x256xf32>
    %c6_28 = arith.constant 6 : index
    %382 = memref.load %arg1[%c6_28] : memref<98xf32, #tpu.memory_space<smem>>
    %c55 = arith.constant 55 : index
    %383 = memref.load %arg1[%c55] : memref<98xf32, #tpu.memory_space<smem>>
    %384 = vector.broadcast %382 : f32 to vector<2x256xf32>
    %385 = arith.mulf %384, %378 : vector<2x256xf32>
    %386 = vector.broadcast %383 : f32 to vector<2x256xf32>
    %387 = arith.mulf %386, %381 : vector<2x256xf32>
    %388 = arith.addf %385, %387 : vector<2x256xf32>
    %389 = arith.addf %325, %388 : vector<2x256xf32>
    %c13 = arith.constant 13 : index
    %390 = memref.load %arg1[%c13] : memref<98xf32, #tpu.memory_space<smem>>
    %c62 = arith.constant 62 : index
    %391 = memref.load %arg1[%c62] : memref<98xf32, #tpu.memory_space<smem>>
    %392 = vector.broadcast %390 : f32 to vector<2x256xf32>
    %393 = arith.mulf %392, %378 : vector<2x256xf32>
    %394 = vector.broadcast %391 : f32 to vector<2x256xf32>
    %395 = arith.mulf %394, %381 : vector<2x256xf32>
    %396 = arith.addf %393, %395 : vector<2x256xf32>
    %397 = arith.addf %333, %396 : vector<2x256xf32>
    %c20 = arith.constant 20 : index
    %398 = memref.load %arg1[%c20] : memref<98xf32, #tpu.memory_space<smem>>
    %c69 = arith.constant 69 : index
    %399 = memref.load %arg1[%c69] : memref<98xf32, #tpu.memory_space<smem>>
    %400 = vector.broadcast %398 : f32 to vector<2x256xf32>
    %401 = arith.mulf %400, %378 : vector<2x256xf32>
    %402 = vector.broadcast %399 : f32 to vector<2x256xf32>
    %403 = arith.mulf %402, %381 : vector<2x256xf32>
    %404 = arith.addf %401, %403 : vector<2x256xf32>
    %405 = arith.addf %341, %404 : vector<2x256xf32>
    %c27 = arith.constant 27 : index
    %406 = memref.load %arg1[%c27] : memref<98xf32, #tpu.memory_space<smem>>
    %c76 = arith.constant 76 : index
    %407 = memref.load %arg1[%c76] : memref<98xf32, #tpu.memory_space<smem>>
    %408 = vector.broadcast %406 : f32 to vector<2x256xf32>
    %409 = arith.mulf %408, %378 : vector<2x256xf32>
    %410 = vector.broadcast %407 : f32 to vector<2x256xf32>
    %411 = arith.mulf %410, %381 : vector<2x256xf32>
    %412 = arith.addf %409, %411 : vector<2x256xf32>
    %413 = arith.addf %349, %412 : vector<2x256xf32>
    %c34 = arith.constant 34 : index
    %414 = memref.load %arg1[%c34] : memref<98xf32, #tpu.memory_space<smem>>
    %c83 = arith.constant 83 : index
    %415 = memref.load %arg1[%c83] : memref<98xf32, #tpu.memory_space<smem>>
    %416 = vector.broadcast %414 : f32 to vector<2x256xf32>
    %417 = arith.mulf %416, %378 : vector<2x256xf32>
    %418 = vector.broadcast %415 : f32 to vector<2x256xf32>
    %419 = arith.mulf %418, %381 : vector<2x256xf32>
    %420 = arith.addf %417, %419 : vector<2x256xf32>
    %421 = arith.addf %357, %420 : vector<2x256xf32>
    %c41 = arith.constant 41 : index
    %422 = memref.load %arg1[%c41] : memref<98xf32, #tpu.memory_space<smem>>
    %c90 = arith.constant 90 : index
    %423 = memref.load %arg1[%c90] : memref<98xf32, #tpu.memory_space<smem>>
    %424 = vector.broadcast %422 : f32 to vector<2x256xf32>
    %425 = arith.mulf %424, %378 : vector<2x256xf32>
    %426 = vector.broadcast %423 : f32 to vector<2x256xf32>
    %427 = arith.mulf %426, %381 : vector<2x256xf32>
    %428 = arith.addf %425, %427 : vector<2x256xf32>
    %429 = arith.addf %365, %428 : vector<2x256xf32>
    %c48 = arith.constant 48 : index
    %430 = memref.load %arg1[%c48] : memref<98xf32, #tpu.memory_space<smem>>
    %c97 = arith.constant 97 : index
    %431 = memref.load %arg1[%c97] : memref<98xf32, #tpu.memory_space<smem>>
    %432 = vector.broadcast %430 : f32 to vector<2x256xf32>
    %433 = arith.mulf %432, %378 : vector<2x256xf32>
    %434 = vector.broadcast %431 : f32 to vector<2x256xf32>
    %435 = arith.mulf %434, %381 : vector<2x256xf32>
    %436 = arith.addf %433, %435 : vector<2x256xf32>
    %437 = arith.addf %373, %436 : vector<2x256xf32>
    %c0_29 = arith.constant 0 : index
    %438 = memref.load %arg2[%c0_29] : memref<1xf32, #tpu.memory_space<smem>>
    %439 = vector.broadcast %438 : f32 to vector<2x256xf32>
    %440 = arith.addf %413, %439 : vector<2x256xf32>
    %c48_i32 = arith.constant 48 : i32
    %441 = tpu.dynamic_rotate %389 by %c48_i32 dim 1 : vector<2x256xf32>, i32 -> vector<2x256xf32>
    %c0_30 = arith.constant 0 : index
    %c0_31 = arith.constant 0 : index
    %c0_32 = arith.constant 0 : index
    %442 = vector.load %arg4[%c0_30, %c0_31, %c0_32] : memref<7x1x256xf32, #tpu.memory_space<vmem>>, vector<1x1x256xf32>
    %443 = vector.shape_cast %442 : vector<1x1x256xf32> to vector<1x256xf32>
    %444 = vector.broadcast %443 : vector<1x256xf32> to vector<2x256xf32>
    %445 = arith.mulf %441, %444 : vector<2x256xf32>
    %446 = arith.addf %440, %445 : vector<2x256xf32>
    %c32_i32 = arith.constant 32 : i32
    %447 = tpu.dynamic_rotate %397 by %c32_i32 dim 1 : vector<2x256xf32>, i32 -> vector<2x256xf32>
    %c1_33 = arith.constant 1 : index
    %c0_34 = arith.constant 0 : index
    %c0_35 = arith.constant 0 : index
    %448 = vector.load %arg4[%c1_33, %c0_34, %c0_35] : memref<7x1x256xf32, #tpu.memory_space<vmem>>, vector<1x1x256xf32>
    %449 = vector.shape_cast %448 : vector<1x1x256xf32> to vector<1x256xf32>
    %450 = vector.broadcast %449 : vector<1x256xf32> to vector<2x256xf32>
    %451 = arith.mulf %447, %450 : vector<2x256xf32>
    %452 = arith.addf %446, %451 : vector<2x256xf32>
    %c16_i32 = arith.constant 16 : i32
    %453 = tpu.dynamic_rotate %405 by %c16_i32 dim 1 : vector<2x256xf32>, i32 -> vector<2x256xf32>
    %c2_36 = arith.constant 2 : index
    %c0_37 = arith.constant 0 : index
    %c0_38 = arith.constant 0 : index
    %454 = vector.load %arg4[%c2_36, %c0_37, %c0_38] : memref<7x1x256xf32, #tpu.memory_space<vmem>>, vector<1x1x256xf32>
    %455 = vector.shape_cast %454 : vector<1x1x256xf32> to vector<1x256xf32>
    %456 = vector.broadcast %455 : vector<1x256xf32> to vector<2x256xf32>
    %457 = arith.mulf %453, %456 : vector<2x256xf32>
    %458 = arith.addf %452, %457 : vector<2x256xf32>
    %c240_i32 = arith.constant 240 : i32
    %459 = tpu.dynamic_rotate %421 by %c240_i32 dim 1 : vector<2x256xf32>, i32 -> vector<2x256xf32>
    %c4_39 = arith.constant 4 : index
    %c0_40 = arith.constant 0 : index
    %c0_41 = arith.constant 0 : index
    %460 = vector.load %arg4[%c4_39, %c0_40, %c0_41] : memref<7x1x256xf32, #tpu.memory_space<vmem>>, vector<1x1x256xf32>
    %461 = vector.shape_cast %460 : vector<1x1x256xf32> to vector<1x256xf32>
    %462 = vector.broadcast %461 : vector<1x256xf32> to vector<2x256xf32>
    %463 = arith.mulf %459, %462 : vector<2x256xf32>
    %464 = arith.addf %458, %463 : vector<2x256xf32>
    %c224_i32 = arith.constant 224 : i32
    %465 = tpu.dynamic_rotate %429 by %c224_i32 dim 1 : vector<2x256xf32>, i32 -> vector<2x256xf32>
    %c5_42 = arith.constant 5 : index
    %c0_43 = arith.constant 0 : index
    %c0_44 = arith.constant 0 : index
    %466 = vector.load %arg4[%c5_42, %c0_43, %c0_44] : memref<7x1x256xf32, #tpu.memory_space<vmem>>, vector<1x1x256xf32>
    %467 = vector.shape_cast %466 : vector<1x1x256xf32> to vector<1x256xf32>
    %468 = vector.broadcast %467 : vector<1x256xf32> to vector<2x256xf32>
    %469 = arith.mulf %465, %468 : vector<2x256xf32>
    %470 = arith.addf %464, %469 : vector<2x256xf32>
    %c208_i32 = arith.constant 208 : i32
    %471 = tpu.dynamic_rotate %437 by %c208_i32 dim 1 : vector<2x256xf32>, i32 -> vector<2x256xf32>
    %c6_45 = arith.constant 6 : index
    %c0_46 = arith.constant 0 : index
    %c0_47 = arith.constant 0 : index
    %472 = vector.load %arg4[%c6_45, %c0_46, %c0_47] : memref<7x1x256xf32, #tpu.memory_space<vmem>>, vector<1x1x256xf32>
    %473 = vector.shape_cast %472 : vector<1x1x256xf32> to vector<1x256xf32>
    %474 = vector.broadcast %473 : vector<1x256xf32> to vector<2x256xf32>
    %475 = arith.mulf %471, %474 : vector<2x256xf32>
    %476 = arith.addf %470, %475 : vector<2x256xf32>
    %477 = arith.negf %476 : vector<2x256xf32>
    %478 = math.exp %477 : vector<2x256xf32>
    %cst_48 = arith.constant 1.000000e+00 : f32
    %479 = vector.broadcast %cst_48 : f32 to vector<2x256xf32>
    %480 = arith.addf %479, %478 : vector<2x256xf32>
    %481 = arith.divf %479, %480 : vector<2x256xf32>
    %482 = vector.shape_cast %481 : vector<2x256xf32> to vector<2x1x256xf32>
    %483 = vector.broadcast %482 : vector<2x1x256xf32> to vector<2x4x256xf32>
    %484 = arith.mulf %0, %483 : vector<2x4x256xf32>
    %c0_49 = arith.constant 0 : index
    %c0_50 = arith.constant 0 : index
    %c0_51 = arith.constant 0 : index
    %485 = vector.load %arg6[%c0_49, %c0_50, %c0_51] : memref<2x4x256xf32, #tpu.memory_space<vmem>>, vector<2x4x256xf32>
    tpu.vector_store %arg6[%c0_49, %c0_50, %c0_51], %484 {strides = array<i32>} : memref<2x4x256xf32, #tpu.memory_space<vmem>>, vector<2x4x256xf32>,
    return
  }
  func.func @transform_0(%arg0: i32) -> i32 {
    %c0_i32 = arith.constant 0 : i32
    %c0_i32_0 = arith.constant 0 : i32
    return %c0_i32 : i32
  }
  func.func @transform_1(%arg0: i32) -> i32 {
    %c0_i32 = arith.constant 0 : i32
    %c0_i32_0 = arith.constant 0 : i32
    return %c0_i32 : i32
  }
  func.func @transform_2(%arg0: i32) -> (i32, i32, i32) {
    %c0_i32 = arith.constant 0 : i32
    %c0_i32_0 = arith.constant 0 : i32
    %c0_i32_1 = arith.constant 0 : i32
    %c0_i32_2 = arith.constant 0 : i32
    return %c0_i32, %c0_i32_0, %c0_i32_1 : i32, i32, i32
  }
  func.func @transform_3(%arg0: i32) -> (i32, i32, i32) {
    %c0_i32 = arith.constant 0 : i32
    %c0_i32_0 = arith.constant 0 : i32
    %c0_i32_1 = arith.constant 0 : i32
    %c0_i32_2 = arith.constant 0 : i32
    return %c0_i32, %c0_i32_0, %c0_i32_1 : i32, i32, i32
  }
  func.func @transform_4(%arg0: i32) -> (i32, i32, i32) {
    %c0_i32 = arith.constant 0 : i32
    %c0_i32_0 = arith.constant 0 : i32
    %c0_i32_1 = arith.constant 0 : i32
    return %arg0, %c0_i32, %c0_i32_0 : i32, i32, i32
  }
  func.func @transform_5(%arg0: i32) -> (i32, i32, i32) {
    %c0_i32 = arith.constant 0 : i32
    %c0_i32_0 = arith.constant 0 : i32
    %c0_i32_1 = arith.constant 0 : i32
    return %arg0, %c0_i32, %c0_i32_0 : i32, i32, i32
  }
}

</mosaic_0001>

<bundles_post_ra>
// kernel: tpu_custom_call.1
= control target key start
LH: loop header
LB: loop body
LE: loop exit
PB: predicated region body
PF: predicated region fallthrough
CT: control target
= control target key end

     0   :  { %s2800_s0 = inlined_call_operand.vmem [shape: f32[98], index: 0, kind: input, shape index: {}]   ;;  %s2801_s1 = inlined_call_operand.<no memory space> [shape: f32[1], index: 1, kind: input, shape index: {}]   ;;  %s2802_s2 = inlined_call_operand.hbm [shape: f32[7,1,256], index: 2, kind: input, shape index: {}]   ;;  %s2803_s3 = inlined_call_operand.hbm [shape: f32[7,1,256], index: 3, kind: input, shape index: {}]   ;;  %s2804_s4 = inlined_call_operand.hbm [shape: f32[2,4,256], index: 4, kind: input, shape index: {}]   ;;  %s2805_s5 = inlined_call_operand.hbm [shape: f32[2,4,256], index: 5, kind: output, shape index: {}]  }
   0x1   :  { %2930 = sst [smem:[#allocation85_spill]] %s2801_s1 }
   0x2   :  { %2931 = sst [smem:[#allocation86_spill]] %s2805_s5 }
   0x3   :  { %11 = vsyncpa [#allocation6], 0 }
   0x4   :  { %12 = vsyncpa [#allocation4], 0 }
   0x5   :  { %13 = vsyncpa [#allocation9], 0 }
   0x6   :  { %14 = vsyncpa [#allocation5], 0  ;;  %s21_s20 = sshll.u32 %s2800_s0, 4  ;;  %s1481_s21 = smov [#allocation8]   ;;  %s22_s20 = int_to_ptr.vmem [resolvable:$true] %s21_s20 }
   0x7   :  { %s44_s22 = sshll.u32 %s1481_s21, 4  ;;  %s1373_s25 = scalar_lea.hbm %s2803_s3, 224  ;;  %s45_s22 = int_to_ptr.vmem [resolvable:$true] %s44_s22 }
   0x8   :  { %p1374_p0 = scmp.ne.s32.totalorder %s2803_s3, %s1373_s25  ;;  %p1377_p1 = scmp.lt.u32.totalorder %s1373_s25, %s2803_s3 }
   0xa   :  { %p1379_p2 = pnand %p1377_p1, %p1374_p0 }
   0xc   :  { %1382 = shalt.err (!%p1379_p2)
}
   0xd   :  { %s1383_s30 = scalar_lea.vmem %s45_s22, 224  ;;  %p1388_p4 = scmp.lt.s32.totalorder %s45_s22, %s45_s22 }
   0xe   :  { %p1384_p3 = scmp.ne.s32.totalorder %s45_s22, %s1383_s30  ;;  %p1389_p5 = scmp.lt.s32.totalorder %s1383_s30, %s1383_s30 }
  0x10   :  { %p1390_p6 = por %p1389_p5, %p1388_p4 }
  0x12   :  { %p1391_p7 = pnand %p1390_p6, %p1384_p3 }
  0x14   :  { %1394 = shalt.err (!%p1391_p7)
}
  0x15   :  { %s2808_s0 = smov 32   ;;  %s1483_s6 = smov 2  }
  0x16   :  { %50 = dma.hbm_to_vmem [thread:$0]  %s2803_s3, 224, %s45_s22, [#allocation9], %s2808_s0, %s2808_s0, %s1483_s6  }
  0x17   :  { %s1395_s9 = scalar_lea.vmem %s22_s20, 16  ;;  %p1400_p9 = scmp.lt.s32.totalorder %s22_s20, %s22_s20 }
  0x18   :  { %p1396_p8 = scmp.ne.s32.totalorder %s22_s20, %s1395_s9  ;;  %p1401_p10 = scmp.lt.s32.totalorder %s1395_s9, %s1395_s9 }
  0x1a   :  { %p1402_p11 = por %p1401_p10, %p1400_p9 }
  0x1c   :  { %p1403_p12 = pnand %p1402_p11, %p1396_p8 }
  0x1e   :  { %1406 = shalt.err (!%p1403_p12)
}
  0x1f   :  { %s1484_s10 = smov [#allocation3]   ;;  %s1485_s11 = smov [#allocation7]  }
  0x20   :  { %24 = dma.vmem_to_smem %s22_s20, 16, %s1484_s10, [#allocation6]  }
  0x21   :  { %s32_s12 = sshll.u32 %s1485_s11, 4  ;;  %s1486_s13 = smov [#allocation10]   ;;  %s33_s12 = int_to_ptr.vmem [resolvable:$true] %s32_s12 }
  0x22   :  { %s56_s14 = sshll.u32 %s1486_s13, 4  ;;  %s1407_s3 = scalar_lea.hbm %s2802_s2, 224  ;;  %s1549_s14 = int_to_ptr.vmem [resolvable:$true] %s56_s14 }
  0x23   :  { %p1408_p13 = scmp.ne.s32.totalorder %s2802_s2, %s1407_s3  ;;  %p1411_p0 = scmp.lt.u32.totalorder %s1407_s3, %s2802_s2 }
  0x25   :  { %p1413_p1 = pnand %p1411_p0, %p1408_p13 }
  0x27   :  { %1416 = shalt.err (!%p1413_p1)
}
  0x28   :  { %s1417_s20 = scalar_lea.vmem %s33_s12, 224  ;;  %p1422_p3 = scmp.lt.s32.totalorder %s33_s12, %s33_s12 }
  0x29   :  { %p1418_p2 = scmp.ne.s32.totalorder %s33_s12, %s1417_s20  ;;  %p1423_p4 = scmp.lt.s32.totalorder %s1417_s20, %s1417_s20 }
  0x2b   :  { %p1424_p5 = por %p1423_p4, %p1422_p3 }
  0x2d   :  { %p1425_p6 = pnand %p1424_p5, %p1418_p2 }
  0x2f   :  { %1428 = shalt.err (!%p1425_p6)
}
  0x30   :  { %38 = dma.hbm_to_vmem [thread:$0]  %s2802_s2, 224, %s33_s12, [#allocation4], %s2808_s0, %s2808_s0, %s1483_s6  }
  0x31   :  { %s1429_s26 = scalar_lea.hbm %s2804_s4, 256 }
  0x32   :  { %p1430_p7 = scmp.ne.s32.totalorder %s2804_s4, %s1429_s26  ;;  %p1433_p8 = scmp.lt.u32.totalorder %s1429_s26, %s2804_s4 }
  0x34   :  { %p1435_p9 = pnand %p1433_p8, %p1430_p7 }
  0x36   :  { %1438 = shalt.err (!%p1435_p9)
}
  0x37   :  { %s1439_s7 = scalar_lea.vmem %s1549_s14, 256  ;;  %p1444_p11 = scmp.lt.s32.totalorder %s1549_s14, %s1549_s14 }
  0x38   :  { %p1440_p10 = scmp.ne.s32.totalorder %s1549_s14, %s1439_s7  ;;  %p1445_p12 = scmp.lt.s32.totalorder %s1439_s7, %s1439_s7 }
  0x3a   :  { %p1446_p13 = por %p1445_p12, %p1444_p11 }
  0x3c   :  { %p1447_p0 = pnand %p1446_p13, %p1440_p10 }
  0x3e   :  { %1450 = shalt.err (!%p1447_p0)
}
  0x3f   :  { %s2806_s2 = smov 128   ;;  %s2807_s8 = smov 8  }
  0x40   :  { %62 = dma.hbm_to_vmem [thread:$0]  %s2804_s4, 256, %s1549_s14, [#allocation9], %s2806_s2, %s2806_s2, %s2807_s8  }
  0x41   :  { %1473 = dma.done.wait [#allocation6], 16  }
  0x42   :  { %1474 = vsyncadd [#allocation6], 4294967280 }
  0x43   :  { %1475 = dma.done.wait [#allocation4], 224  }
  0x44   :  { %1476 = vsyncadd [#allocation4], 4294967072 }
  0x45   :  { %1477 = dma.done.wait [#allocation9], 480  }
  0x46   :  { %1478 = vsyncadd [#allocation9], 4294966816 }
  0x47   :  { %75 = sfence }
  0x48   :  { %v76_v0 = vld [vmem:[#allocation10] sm:$0xff]  ;;  %v77_v1 = vld [vmem:[#allocation10 + $0x8] sm:$0xff]  ;;  %vm84_vm0 = vcmask 1043456   ;;  %vm150_vm1 = vcmask 1041409   ;;  %s1489_s4 = smov 3   ;;  %s1490_s11 = smov 1  }
  0x49   :  { %v85_v2 = vsel %vm84_vm0, %v76_v0, -inf  ;;  %v99_v3 = vsel %vm84_vm0, %v77_v1, -inf  ;;  %v113_v4 = vsel %vm84_vm0, %v76_v0, 0.0  ;;  %v127_v5 = vsel %vm84_vm0, %v77_v1, 0.0  ;;  %s1491_s12 = smov 127   ;;  %s1492_s13 = smov 126  }
  0x4a   :  { %v86_v6 = vrot.slane %v85_v2, 4  ;;  %v100_v7 = vrot.slane %v99_v3, 4  ;;  %v114_v8 = vrot.slane %v113_v4, 4  ;;  %v128_v9 = vrot.slane %v127_v5, 4  ;;  %s1493_s14 = smov 125   ;;  %s1626_s15 = sld [smem:[#allocation3 + $0x1]] }
  0x4b   :  { %v80_v10 = vcombine.high %v76_v0, %v76_v0  ;;  %v81_v11 = vcombine.high %v77_v1, %v77_v1  ;;  %s1630_s16 = sld [smem:[#allocation3 + $0x8]]  ;;  %s1634_s17 = sld [smem:[#allocation3 + $0x9]] }
  0x4c   :  { %v87_v12 = vmax.f32 %v85_v2, %v86_v6  ;;  %v101_v13 = vmax.f32 %v99_v3, %v100_v7  ;;  %v115_v14 = vadd.f32 %v114_v8, %v113_v4  ;;  %v129_v15 = vadd.f32 %v128_v9, %v127_v5  ;;  %s1632_s3 = sld [smem:[#allocation3]]  ;;  %s1638_s18 = sld [smem:[#allocation3 + $0x31]]  ;;  %v264_v6 = vld [vmem:[#allocation7 + $0x2] sm:$0x3]  ;;  %v378_v9 = vld [vmem:[#allocation7 + $0x4] sm:$0x3] }
  0x4d   :  { %v92_v16 = vsel %vm84_vm0, %v80_v10, -inf  ;;  %v106_v17 = vsel %vm84_vm0, %v81_v11, -inf  ;;  %v120_v18 = vsel %vm84_vm0, %v80_v10, 0.0  ;;  %v134_v19 = vsel %vm84_vm0, %v81_v11, 0.0  ;;  %s1640_s19 = sld [smem:[#allocation3 + $0xf]]  ;;  %s1283_s21 = sld [smem:[#allocation3 + $0x3]] }
  0x4e   :  { %v88_v20 = vrot.slane %v87_v12, 2  ;;  %v102_v21 = vrot.slane %v101_v13, 2  ;;  %v116_v22 = vrot.slane %v115_v14, 2  ;;  %v130_v23 = vrot.slane %v129_v15, 2  ;;  %s1284_s20 = sld [smem:[#allocation3 + $0x34]]  ;;  %s1642_s22 = sld [smem:[#allocation3 + $0x32]] }
  0x4f   :  { %v93_v24 = vrot.slane %v92_v16, 4  ;;  %v107_v25 = vrot.slane %v106_v17, 4  ;;  %v121_v26 = vrot.slane %v120_v18, 4  ;;  %v135_v27 = vrot.slane %v134_v19, 4  ;;  %s1644_s23 = sld [smem:[#allocation3 + $0x7]]  ;;  %s1646_s24 = sld [smem:[#allocation3 + $0x38]] }
  0x50   :  { %v89_v28 = vmax.f32 %v87_v12, %v88_v20  ;;  %v103_v29 = vmax.f32 %v101_v13, %v102_v21  ;;  %v117_v30 = vadd.f32 %v116_v22, %v115_v14  ;;  %v131_v31 = vadd.f32 %v130_v23, %v129_v15  ;;  %s1648_s25 = sld [smem:[#allocation3 + $0x39]]  ;;  %s1656_s26 = sld [smem:[#allocation3 + $0xe]]  ;;  %v145_v10 = vld [vmem:[#allocation7] sm:$0x3] }
  0x51   :  { %v94_v32 = vmax.f32 %v92_v16, %v93_v24  ;;  %v108_v33 = vmax.f32 %v106_v17, %v107_v25  ;;  %v122_v34 = vadd.f32 %v121_v26, %v120_v18  ;;  %v136_v35 = vadd.f32 %v135_v27, %v134_v19  ;;  %2933 = sst [smem:[#allocation17_spill]] %s1634_s17  ;;  %s1658_s27 = sld [smem:[#allocation3 + $0x10]] }
  0x52   :  { %v90_v36 = vrot.slane %v89_v28, 1  ;;  %v104_v37 = vrot.slane %v103_v29, 1  ;;  %v118_v38 = vrot.slane %v117_v30, 1  ;;  %v132_v39 = vrot.slane %v131_v31, 1  ;;  %2932 = sst [smem:[#allocation16_spill]] %s1632_s3  ;;  %s1660_s28 = sld [smem:[#allocation3 + $0xa]] }
  0x53   :  { %v95_v40 = vrot.slane %v94_v32, 2  ;;  %v109_v41 = vrot.slane %v108_v33, 2  ;;  %v123_v42 = vrot.slane %v122_v34, 2  ;;  %v137_v43 = vrot.slane %v136_v35, 2  ;;  %2935 = sst [smem:[#allocation19_spill]] %s1638_s18  ;;  %s1662_s29 = sld [smem:[#allocation3 + $0x3f]] }
  0x54   :  { %v1594_v44 = vmax.f32 %v89_v28, %v90_v36  ;;  %v1596_v45 = vmax.f32 %v103_v29, %v104_v37  ;;  %v119_v46 = vadd.f32 %v118_v38, %v117_v30  ;;  %v133_v47 = vadd.f32 %v132_v39, %v131_v31  ;;  %2936 = sst [smem:[#allocation20_spill]] %s1642_s22  ;;  %s1687_s9 = sld [smem:[#allocation3 + $0x11]] }
  0x55   :  { %v96_v48 = vmax.f32 %v94_v32, %v95_v40  ;;  %v110_v49 = vmax.f32 %v108_v33, %v109_v41  ;;  %v124_v50 = vadd.f32 %v123_v42, %v122_v34  ;;  %v138_v51 = vadd.f32 %v137_v43, %v136_v35  ;;  %2937 = sst [smem:[#allocation21_spill]] %s1644_s23  ;;  %s1664_s30 = sld [smem:[#allocation3 + $0x33]] }
  0x56   :  { %v151_v52 = vsel %vm150_vm1, %v1596_v45, %v1594_v44  ;;  %v1601_v53 = vmul.f32 0.25, %v119_v46  ;;  %v1603_v54 = vmul.f32 0.25, %v133_v47  ;;  %v159_v4 = vlaneseq  ;;  %2938 = sst [smem:[#allocation22_spill]] %s1646_s24  ;;  %s1666_s7 = sld [smem:[#allocation3 + $0x3b]]  ;;  %v674_v47 = vld [vmem:[#allocation7 + $0x8] sm:$0x3] }
  0x57   :  { %155 = vrot.lane.b32.xlu0 %v151_v52, %s1489_s4  ;;  %v97_v55 = vrot.slane %v96_v48, 1  ;;  %v111_v56 = vrot.slane %v110_v49, 1  ;;  %v125_v57 = vrot.slane %v124_v50, 1  ;;  %v139_v58 = vrot.slane %v138_v51, 1  ;;  %2939 = sst [smem:[#allocation23_spill]] %s1648_s25  ;;  %s1689_s10 = sld [smem:[#allocation3 + $0x42]] }
  0x58   :  { %v181_v59 = vsel %vm150_vm1, %v1603_v54, %v1601_v53  ;;  %v1636_v5 = vshrl.u32 %v159_v4, 7  ;;  %2942 = sst [smem:[#allocation26_spill]] %s1656_s26  ;;  %v1668_v11 = vand.u32 127, %v159_v4  ;;  %v493_v19 = vstv %s1283_s21  ;;  %s1720_s21 = sld [smem:[#allocation3 + $0x35]] }
  0x59   :  { %185 = vrot.lane.b32.xlu1 %v181_v59, %s1489_s4  ;;  %v1608_v60 = vmax.f32 %v96_v48, %v97_v55  ;;  %v1610_v61 = vmax.f32 %v110_v49, %v111_v56  ;;  %v126_v62 = vadd.f32 %v125_v57, %v124_v50  ;;  %v140_v63 = vadd.f32 %v139_v58, %v138_v51  ;;  %2943 = sst [smem:[#allocation27_spill]] %s1658_s27  ;;  %s1727_s2 = sld [smem:[#allocation3 + $0x5]] }
  0x5a   :  { %2934 = vst [vmem:[#allocation18_spill] sm:$0xff] %v1636_v5  ;;  %v1651_v7 = vsub.s32 0, %v1636_v5  ;;  %v1654_v8 = vsub.s32 1, %v1636_v5  ;;  %2944 = sst [smem:[#allocation28_spill]] %s1662_s29  ;;  %v498_v20 = vstv %s1284_s20  ;;  %v295_v22 = vstv %s1626_s15  ;;  %s1723_s20 = sld [smem:[#allocation3 + $0x3c]] }
  0x5b   :  { %265 = vrot.lane.b32.xlu0 %v151_v52, %s1483_s6  ;;  %v152_v0 = vsel %vm150_vm1, %v1610_v61, %v1608_v60  ;;  %v1617_v1 = vmul.f32 0.25, %v126_v62  ;;  %v1619_v2 = vmul.f32 0.25, %v140_v63  ;;  %2945 = sst [smem:[#allocation29_spill]] %s1664_s30  ;;  %v307_v27 = vstv %s1630_s16  ;;  %s1743_s0 = sld [smem:[#allocation3 + $0x3d]] }
  0x5c   :  { %2940 = vst [vmem:[#allocation24_spill] sm:$0xff] %v1651_v7  ;;  %2941 = vst [vmem:[#allocation25_spill] sm:$0xff] %v1654_v8  ;;  %v1672_v13 = vrot.slane %v264_v6, %v1651_v7  ;;  %v1675_v14 = vrot.slane %v264_v6, %v1654_v8  ;;  %v1678_v15 = vrot.slane %v378_v9, %v1651_v7  ;;  %v519_v34 = vstv %s1660_s28  ;;  %s1733_s28 = sld [smem:[#allocation3 + $0xc]]  ;;  %s1739_s8 = sld [smem:[#allocation3 + $0x12]] }
  0x5d   :  { %267 = vrot.lane.b32.xlu1 %v152_v0, %s1483_s6  ;;  %v182_v3 = vsel %vm150_vm1, %v1619_v2, %v1617_v1  ;;  %v1682_v17 = vrot.slane %v378_v9, %v1654_v8  ;;  %v1685_v18 = vrot.slane %v145_v10, %v1651_v7  ;;  %v1692_v21 = vrot.slane %v145_v10, %v1654_v8  ;;  %s1747_s5 = sld [smem:[#allocation3 + $0x43]]  ;;  %s1749_s1 = sld [smem:[#allocation3 + $0x6]]  ;;  %v788_v9 = vld [vmem:[#allocation7 + $0xa] sm:$0x3] }
  0x5e   :  { %v495_v29 = vmul.f32 %v493_v19, %v1608_v60  ;;  %v497_v30 = vmul.f32 %v493_v19, %v1610_v61  ;;  %v500_v31 = vmul.f32 %v498_v20, %v1617_v1  ;;  %v502_v32 = vmul.f32 %v498_v20, %v1619_v2  ;;  %2951 = sst [smem:[#allocation35_spill]] %s1720_s21  ;;  %s1751_s30 = sld [smem:[#allocation3 + $0xd]] }
  0x5f   :  { %379 = vrot.lane.b32.xlu0 %v151_v52, %s1490_s11  ;;  %v524_v38 = vstv %s1666_s7  ;;  %v319_v39 = vstv %s1640_s19  ;;  %2953 = sst [smem:[#allocation37_spill]] %s1727_s2  ;;  %v494_v41 = vmul.f32 %v493_v19, %v1594_v44  ;;  %v496_v42 = vmul.f32 %v493_v19, %v1596_v45  ;;  %s1735_s7 = sld [smem:[#allocation3 + $0x36]] }
  0x60   :  { %2952 = sst [smem:[#allocation36_spill]] %s1723_s20  ;;  %v499_v43 = vmul.f32 %v498_v20, %v1601_v53  ;;  %v501_v46 = vmul.f32 %v498_v20, %v1603_v54  ;;  %v504_v48 = vadd.f32 %v500_v31, %v495_v29  ;;  %v506_v49 = vadd.f32 %v502_v32, %v497_v30  ;;  %s1767_s25 = sld [smem:[#allocation3 + $0x3e]] }
  0x61   :  { %381 = vrot.lane.b32.xlu1 %v152_v0, %s1490_s11  ;;  %v521_v50 = vmul.f32 %v519_v34, %v1608_v60  ;;  %v523_v51 = vmul.f32 %v519_v34, %v1610_v61  ;;  %v528_v55 = vmul.f32 %v524_v38, %v1619_v2  ;;  %2957 = sst [smem:[#allocation41_spill]] %s1743_s0  ;;  %v545_v56 = vstv %s1687_s9  ;;  %s1763_s9 = sld [smem:[#allocation3 + $0x37]] }
  0x62   :  { %2954 = sst [smem:[#allocation38_spill]] %s1733_s28  ;;  %v550_v57 = vstv %s1689_s10  ;;  %v520_v58 = vmul.f32 %v519_v34, %v1594_v44  ;;  %v525_v62 = vmul.f32 %v524_v38, %v1601_v53  ;;  %v527_v63 = vmul.f32 %v524_v38, %v1603_v54  ;;  %s1773_s22 = sld [smem:[#allocation3 + $0x1d]] }
  0x63   :  { %157 = vrot.lane.b32.xlu0 %v152_v0, %s1489_s4  ;;  %2956 = sst [smem:[#allocation40_spill]] %s1739_s8  ;;  %v503_v4 = vadd.f32 %v499_v43, %v494_v41  ;;  %v505_v6 = vadd.f32 %v501_v46, %v496_v42  ;;  %s1765_s10 = sld [smem:[#allocation3 + $0x13]]  ;;  %v547_v10 = vmul.f32 %v545_v56, %v1608_v60  ;;  %v549_v19 = vmul.f32 %v545_v56, %v1610_v61 }
  0x64   :  { %2958 = sst [smem:[#allocation42_spill]] %s1747_s5  ;;  %v552_v20 = vmul.f32 %v550_v57, %v1617_v1  ;;  %v554_v29 = vmul.f32 %v550_v57, %v1619_v2  ;;  %s1779_s24 = sld [smem:[#allocation3 + $0x50]]  ;;  %v529_v42 = vadd.f32 %v525_v62, %v520_v58  ;;  %v1790_v46 = vrot.slane %v788_v9, %v1651_v7 }
  0x65   :  { %187 = vrot.lane.b32.xlu1 %v182_v3, %s1489_s4  ;;  %s1701_s4 = sld [smem:[#allocation3 + $0x3a]]  ;;  %2955 = sst [smem:[#allocation39_spill]] %s1735_s7  ;;  %vm269_vm2 = vcmp.lt.s32.totalorder %v1668_v11, 2  ;;  %vm383_vm3 = vcmp.lt.s32.totalorder %v1668_v11, 1  ;;  %vm161_vm4 = vcmp.lt.s32.totalorder %v1668_v11, 3  ;;  %vm679_vm5 = vcmp.lt.s32.totalorder %v1668_v11, 127 }
  0x66   :  { %2959 = sst [smem:[#allocation43_spill]] %s1749_s1  ;;  %s1777_s29 = sld [smem:[#allocation3 + $0x1f]]  ;;  %v558_v58 = vadd.f32 %v554_v29, %v549_v19  ;;  %v548_v29 = vmul.f32 %v545_v56, %v1596_v45  ;;  %vm793_vm6 = vcmp.lt.s32.totalorder %v1668_v11, 126  ;;  %vm907_vm7 = vcmp.lt.s32.totalorder %v1668_v11, 125 }
  0x67   :  { %285 = vrot.lane.b32.xlu0 %v181_v59, %s1483_s6  ;;  %2960 = sst [smem:[#allocation44_spill]] %s1751_s30  ;;  %s1785_s18 = sld [smem:[#allocation3 + $0x44]]  ;;  %vm1023_vm8 = vcmp.lt.s32.totalorder %v1668_v11, 48  ;;  %vm1046_vm9 = vcmp.lt.s32.totalorder %v1668_v11, 32  ;;  %vm1070_vm10 = vcmp.lt.s32.totalorder %v1668_v11, 16  ;;  %vm1094_vm11 = vcmp.lt.s32.totalorder %v1668_v11, 112 }
  0x68   :  { %2961 = sst [smem:[#allocation45_spill]] %s1763_s9  ;;  %s1787_s27 = sld [smem:[#allocation3 + $0x1c]]  ;;  %vm1118_vm12 = vcmp.lt.s32.totalorder %v1668_v11, 96  ;;  %vm1142_vm13 = vcmp.lt.s32.totalorder %v1668_v11, 80 }
  0x69   :  { %287 = vrot.lane.b32.xlu1 %v182_v3, %s1483_s6  ;;  %s1628_s6 = sld [smem:[#allocation3 + $0x2]]  ;;  %2962 = sst [smem:[#allocation46_spill]] %s1765_s10 }
  0x6a   :  { %2963 = sst [smem:[#allocation47_spill]] %s1767_s25  ;;  %s1807_s26 = sld [smem:[#allocation3 + $0x45]] }
  0x6b   :  { %399 = vrot.lane.b32.xlu0 %v181_v59, %s1490_s11  ;;  %2946 = sst [smem:[#allocation30_spill]] %s1701_s4  ;;  %s1805_s4 = sld [smem:[#allocation3 + $0x14]] }
  0x6c   :  { %s1815_s21 = sld [smem:[#allocation3 + $0x4e]]  ;;  %s1817_s23 = sld [smem:[#allocation3 + $0x24]] }
  0x6d   :  { %401 = vrot.lane.b32.xlu1 %v182_v3, %s1490_s11  ;;  %s1707_s11 = sld [smem:[#allocation3 + $0x4]]  ;;  %2964 = sst [smem:[#allocation48_spill]] %s1785_s18 }
  0x6e   :  { %2965 = sst [smem:[#allocation49_spill]] %s1787_s27  ;;  %s1827_s2 = sld [smem:[#allocation3 + $0x23]] }
  0x6f   :  { %675 = vrot.lane.b32.xlu0 %v151_v52, %s1491_s12  ;;  %s1829_s28 = sld [smem:[#allocation3 + $0x25]]  ;;  %s1835_s7 = sld [smem:[#allocation3 + $0x26]] }
  0x70   :  { %2968 = sst [smem:[#allocation52_spill]] %s1807_s26  ;;  %s1837_s8 = sld [smem:[#allocation3 + $0x57]] }
  0x71   :  { %677 = vrot.lane.b32.xlu1 %v152_v0, %s1491_s12  ;;  %s1847_s20 = sld [smem:[#allocation3 + $0x4f]]  ;;  %s1857_s3 = sld [smem:[#allocation3 + $0x51]] }
  0x72   :  { %2969 = sst [smem:[#allocation53_spill]] %s1815_s21  ;;  %s1863_s0 = sld [smem:[#allocation3 + $0x55]]  ;;  %v355_v30 = vstv %s1817_s23 }
  0x73   :  { %695 = vrot.lane.b32.xlu0 %v181_v59, %s1491_s12  ;;  %2947 = sst [smem:[#allocation31_spill]] %s1707_s11  ;;  %s1801_s11 = sld [smem:[#allocation3 + $0x1e]] }
  0x74   :  { %2970 = sst [smem:[#allocation54_spill]] %s1827_s2  ;;  %s1877_s25 = sld [smem:[#allocation3 + $0x22]] }
  0x75   :  { %697 = vrot.lane.b32.xlu1 %v182_v3, %s1491_s12  ;;  %s1709_s12 = sld [smem:[#allocation3 + $0x40]]  ;;  %2971 = sst [smem:[#allocation55_spill]] %s1829_s28  ;;  %v623_v31 = vstv %s1835_s7 }
  0x76   :  { %s1865_s5 = sld [smem:[#allocation3 + $0x2b]]  ;;  %s1885_s9 = sld [smem:[#allocation3 + $0x56]]  ;;  %v628_v37 = vstv %s1837_s8 }
  0x77   :  { %789 = vrot.lane.b32.xlu0 %v151_v52, %s1492_s13  ;;  %2972 = sst [smem:[#allocation56_spill]] %s1847_s20  ;;  %s1879_s27 = sld [smem:[#allocation3 + $0x53]] }
  0x78   :  { %2974 = sst [smem:[#allocation58_spill]] %s1863_s0  ;;  %s1887_s30 = sld [smem:[#allocation3 + $0x2a]] }
  0x79   :  { %791 = vrot.lane.b32.xlu1 %v152_v0, %s1492_s13  ;;  %2967 = sst [smem:[#allocation51_spill]] %s1801_s11  ;;  %s1893_s1 = sld [smem:[#allocation3 + $0x5b]] }
  0x7a   :  { %2976 = sst [smem:[#allocation60_spill]] %s1877_s25  ;;  %s1895_s18 = sld [smem:[#allocation3 + $0x2c]] }
  0x7b   :  { %809 = vrot.lane.b32.xlu0 %v181_v59, %s1492_s13  ;;  %2948 = sst [smem:[#allocation32_spill]] %s1709_s12  ;;  %s1855_s12 = sld [smem:[#allocation3 + $0x20]] }
  0x7c   :  { %2975 = sst [smem:[#allocation59_spill]] %s1865_s5  ;;  %s1901_s10 = sld [smem:[#allocation3 + $0x27]] }
  0x7d   :  { %811 = vrot.lane.b32.xlu1 %v182_v3, %s1492_s13  ;;  %s1713_s13 = sld [smem:[#allocation3 + $0xb]]  ;;  %2977 = sst [smem:[#allocation61_spill]] %s1879_s27 }
  0x7e   :  { %2978 = sst [smem:[#allocation62_spill]] %s1887_s30  ;;  %s1903_s17 = sld [smem:[#allocation3 + $0x58]] }
  0x7f   :  { %903 = vrot.lane.b32.xlu0 %v151_v52, %s1493_s14  ;;  %v526_v52 = vmul.f32 %v524_v38, %v1617_v1  ;;  %v1782_v38 = vsel %vm150_vm1, %v506_v49, %v504_v48  ;;  %v1797_v48 = vsel %vm150_vm1, %v505_v6, %v503_v4  ;;  %2979 = sst [smem:[#allocation63_spill]] %s1893_s1  ;;  %s1913_s11 = sld [smem:[#allocation3 + $0x2d]]  ;;  %v630_v49 = vmul.f32 %v628_v37, %v1617_v1 }
  0x80   :  { %2980 = sst [smem:[#allocation64_spill]] %s1895_s18  ;;  %s1915_s8 = sld [smem:[#allocation3 + $0x59]] }
  0x81   :  { %905 = vrot.lane.b32.xlu1 %v152_v0, %s1493_s14  ;;  %v1758_v0 = vrot.slane %v674_v47, %v1651_v7  ;;  %v530_v32 = vadd.f32 %v526_v52, %v521_v50  ;;  %v902_v50 = vld [vmem:[#allocation7 + $0xc] sm:$0x3]  ;;  %s1917_s7 = sld [smem:[#allocation3 + $0x5e]]  ;;  %s1923_s28 = sld [smem:[#allocation3 + $0x29]] }
  0x82   :  { %v1820_v6 = vrot.slane %v902_v50, %v1651_v7  ;;  %s1925_s2 = sld [smem:[#allocation3 + $0x5a]]  ;;  %s1931_s20 = sld [smem:[#allocation3 + $0x16]] }
  0x83   :  { %923 = vrot.lane.b32.xlu0 %v181_v59, %s1493_s14  ;;  %2949 = sst [smem:[#allocation33_spill]] %s1713_s13  ;;  %v522_v59 = vmul.f32 %v519_v34, %v1596_v45  ;;  %v532_v34 = vadd.f32 %v528_v55, %v523_v51  ;;  %s1799_s13 = sld [smem:[#allocation3 + $0x4d]]  ;;  %v556_v55 = vadd.f32 %v552_v20, %v547_v10  ;;  %v546_v20 = vmul.f32 %v545_v56, %v1594_v44 }
  0x84   :  { %s1933_s21 = sld [smem:[#allocation3 + $0x18]]  ;;  %s1939_s26 = sld [smem:[#allocation3 + $0x49]] }
  0x85   :  { %925 = vrot.lane.b32.xlu1 %v182_v3, %s1493_s14  ;;  %s1717_s14 = sld [smem:[#allocation3 + $0x41]]  ;;  %v1761_v3 = vrot.slane %v674_v47, %v1654_v8  ;;  %v531_v43 = vadd.f32 %v527_v63, %v522_v59  ;;  %v1793_v47 = vrot.slane %v788_v9, %v1654_v8  ;;  %v1811_v62 = vsel %vm150_vm1, %v532_v34, %v530_v32  ;;  %s1953_s0 = sld [smem:[#allocation3 + $0x5c]] }
  0x86   :  { %v551_v32 = vmul.f32 %v550_v57, %v1601_v53  ;;  %v553_v34 = vmul.f32 %v550_v57, %v1603_v54  ;;  %v1844_v9 = vsel %vm150_vm1, %v558_v58, %v556_v55  ;;  %v597_v63 = vstv %s1777_s29  ;;  %s1869_s29 = sld [smem:[#allocation3 + $0x21]]  ;;  %2981 = sst [smem:[#allocation65_spill]] %s1915_s8 }
  0x87   :  { %v1824_v10 = vsel %vm150_vm1, %v531_v43, %v529_v42  ;;  %v1840_v42 = vrot.slane %v902_v50, %v1654_v8  ;;  %v602_v59 = vstv %s1779_s24  ;;  %v343_v55 = vstv %s1773_s22  ;;  %s1871_s24 = sld [smem:[#allocation3 + $0x52]]  ;;  %2982 = sst [smem:[#allocation66_spill]] %s1923_s28 }
  0x88   :  { %v555_v56 = vadd.f32 %v551_v32, %v546_v20  ;;  %v557_v51 = vadd.f32 %v553_v34, %v548_v29  ;;  %v599_v43 = vmul.f32 %v597_v63, %v1608_v60  ;;  %v601_v50 = vmul.f32 %v597_v63, %v1610_v61  ;;  %2983 = sst [smem:[#allocation67_spill]] %s1925_s2  ;;  %s1959_s5 = sld [smem:[#allocation3 + $0x5d]] }
  0x89   :  { %2966 = sst [smem:[#allocation50_spill]] %s1799_s13  ;;  %v604_v19 = vmul.f32 %v602_v59, %v1617_v1  ;;  %v606_v58 = vmul.f32 %v602_v59, %v1619_v2  ;;  %v598_v20 = vmul.f32 %v597_v63, %v1594_v44  ;;  %v600_v29 = vmul.f32 %v597_v63, %v1596_v45  ;;  %s1911_s13 = sld [smem:[#allocation3 + $0x28]] }
  0x8a   :  { %v603_v32 = vmul.f32 %v602_v59, %v1601_v53  ;;  %v605_v34 = vmul.f32 %v602_v59, %v1603_v54  ;;  %v1906_v59 = vsel %vm150_vm1, %v557_v51, %v555_v56  ;;  %v625_v51 = vmul.f32 %v623_v31, %v1608_v60  ;;  %2984 = sst [smem:[#allocation68_spill]] %s1931_s20  ;;  %s1963_s27 = sld [smem:[#allocation3 + $0x46]] }
  0x8b   :  { %2950 = sst [smem:[#allocation34_spill]] %s1717_s14  ;;  %s1849_s14 = sld [smem:[#allocation3 + $0x54]]  ;;  %v608_v41 = vadd.f32 %v604_v19, %v599_v43  ;;  %v610_v4 = vadd.f32 %v606_v58, %v601_v50  ;;  %v627_v56 = vmul.f32 %v623_v31, %v1610_v61  ;;  %v632_v19 = vmul.f32 %v628_v37, %v1619_v2 }
  0x8c   :  { %v607_v63 = vadd.f32 %v603_v32, %v598_v20  ;;  %v609_v28 = vadd.f32 %v605_v34, %v600_v29  ;;  %v624_v43 = vmul.f32 %v623_v31, %v1594_v44  ;;  %v626_v50 = vmul.f32 %v623_v31, %v1596_v45  ;;  %s1969_s30 = sld [smem:[#allocation3 + $0x2e]]  ;;  %s1971_s25 = sld [smem:[#allocation3 + $0x5f]] }
  0x8d   :  { %v629_v58 = vmul.f32 %v628_v37, %v1601_v53  ;;  %v631_v20 = vmul.f32 %v628_v37, %v1603_v54  ;;  %v1942_v52 = vsel %vm150_vm1, %v610_v4, %v608_v41  ;;  %v634_v29 = vadd.f32 %v630_v49, %v625_v51  ;;  %s1982_s18 = sld [smem:[#allocation3 + $0x60]]  ;;  %s1995_s1 = sld [smem:[#allocation3 + $0x61]] }
  0x8e   :  { %v636_v34 = vadd.f32 %v632_v19, %v627_v56  ;;  %v1950_v57 = vsel %vm150_vm1, %v609_v28, %v607_v63  ;;  %v649_v51 = vstv %s1913_s11  ;;  %v654_v19 = vstv %s1917_s7  ;;  %s1980_s11 = sld [smem:[#allocation3 + $0x2f]]  ;;  %s1988_s7 = sld [smem:[#allocation3 + $0x30]] }
  0x8f   :  { %2985 = vst [vmem:[#allocation69_spill] sm:$0xff] %v1950_v57  ;;  %v633_v32 = vadd.f32 %v629_v58, %v624_v43  ;;  %v635_v16 = vadd.f32 %v631_v20, %v626_v50  ;;  %v651_v37 = vmul.f32 %v649_v51, %v1608_v60  ;;  %v571_v56 = vstv %s1933_s21  ;;  %s1997_s2 = sld [smem:[#allocation3 + $0x17]]  ;;  %s2009_s20 = sld [smem:[#allocation3 + $0x48]] }
  0x90   :  { %v1975_v43 = vsel %vm150_vm1, %v636_v34, %v634_v29  ;;  %v653_v29 = vmul.f32 %v649_v51, %v1610_v61  ;;  %v656_v34 = vmul.f32 %v654_v19, %v1617_v1  ;;  %v658_v58 = vmul.f32 %v654_v19, %v1619_v2  ;;  %s2004_s21 = sld [smem:[#allocation3 + $0x47]]  ;;  %s2021_s28 = sld [smem:[#allocation3 + $0x4a]] }
  0x91   :  { %2973 = sst [smem:[#allocation57_spill]] %s1849_s14  ;;  %s1955_s14 = sld [smem:[#allocation3 + $0x15]]  ;;  %2986 = vst [vmem:[#allocation70_spill] sm:$0xff] %v1975_v43  ;;  %v1985_v49 = vsel %vm150_vm1, %v635_v16, %v633_v32  ;;  %v576_v20 = vstv %s1939_s26  ;;  %v650_v16 = vmul.f32 %v649_v51, %v1594_v44  ;;  %v652_v32 = vmul.f32 %v649_v51, %v1596_v45 }
  0x92   :  { %2987 = vst [vmem:[#allocation71_spill] sm:$0xff] %v1985_v49  ;;  %v655_v50 = vmul.f32 %v654_v19, %v1601_v53  ;;  %v657_v41 = vmul.f32 %v654_v19, %v1603_v54  ;;  %v572_v28 = vmul.f32 %v571_v56, %v1594_v44  ;;  %v573_v4 = vmul.f32 %v571_v56, %v1608_v60  ;;  %s2015_s26 = sld [smem:[#allocation3 + $0x19]]  ;;  %s2023_s8 = sld [smem:[#allocation3 + $0x1a]] }
  0x93   :  { %v574_v51 = vmul.f32 %v571_v56, %v1596_v45  ;;  %v575_v26 = vmul.f32 %v571_v56, %v1610_v61  ;;  %v577_v19 = vmul.f32 %v576_v20, %v1601_v53  ;;  %v578_v36 = vmul.f32 %v576_v20, %v1617_v1  ;;  %s2999_s15 = sld [smem:[#allocation17_spill]]  ;;  %s3000_s16 = sld [smem:[#allocation16_spill]] }
  0x94   :  { %v579_v23 = vmul.f32 %v576_v20, %v1603_v54  ;;  %v580_v44 = vmul.f32 %v576_v20, %v1619_v2  ;;  %v660_v61 = vadd.f32 %v656_v34, %v651_v37  ;;  %v662_v53 = vadd.f32 %v658_v58, %v653_v29  ;;  %s3003_s19 = sld [smem:[#allocation21_spill]]  ;;  %s3004_s22 = sld [smem:[#allocation26_spill]] }
  0x95   :  { %2988 = sst [smem:[#allocation72_spill]] %s1997_s2  ;;  %v659_v54 = vadd.f32 %v655_v50, %v650_v16  ;;  %v661_v31 = vadd.f32 %v657_v41, %v652_v32  ;;  %v581_v33 = vadd.f32 %v577_v19, %v572_v28  ;;  %v582_v24 = vadd.f32 %v578_v36, %v573_v4  ;;  %s3081_s2 = sld [smem:[#allocation52_spill]] }
  0x96   :  { %2989 = sst [smem:[#allocation73_spill]] %s2009_s20  ;;  %v583_v37 = vadd.f32 %v579_v23, %v574_v51  ;;  %v584_v58 = vadd.f32 %v580_v44, %v575_v26  ;;  %v2035_v34 = vsel %vm150_vm1, %v662_v53, %v660_v61  ;;  %s3008_s23 = sld [smem:[#allocation19_spill]] }
  0x97   :  { %2991 = sst [smem:[#allocation75_spill]] %s2021_s28  ;;  %2993 = vst [vmem:[#allocation77_spill] sm:$0xff] %v2035_v34  ;;  %v2045_v23 = vsel %vm150_vm1, %v661_v31, %v659_v54  ;;  %s3080_s20 = sld [smem:[#allocation47_spill]] }
  0x98   :  { %2990 = sst [smem:[#allocation74_spill]] %s2015_s26  ;;  %2994 = vst [vmem:[#allocation78_spill] sm:$0xff] %v2045_v23  ;;  %v2057_v61 = vsel %vm150_vm1, %v583_v37, %v581_v33  ;;  %v2060_v53 = vsel %vm150_vm1, %v584_v58, %v582_v24  ;;  %s3010_s28 = sld [smem:[#allocation22_spill]] }
  0x99   :  { %2992 = sst [smem:[#allocation76_spill]] %s2023_s8  ;;  %2997 = vst [vmem:[#allocation81_spill] sm:$0xff] %v2057_v61  ;;  %2998 = vst [vmem:[#allocation82_spill] sm:$0xff] %v2060_v53  ;;  %s3006_s8 = sld [smem:[#allocation27_spill]] }
  0x9a   :  { %s3063_s26 = sld [smem:[#allocation41_spill]] }
  0x9c   :  { %v3019_v5 = vstv %s3008_s23  ;;  %s3039_s23 = sld [smem:[#allocation31_spill]] }
  0x9d   :  { %v3020_v8 = vmov %v3019_v5 }
  0x9f   :  { %v3018_v40 = vstv %s3006_s8 }
  0xc9   :  { %v2006_v63 = vpop.permute.xlu0 %155 }
  0xcb   :  { %v186_v45 = vpop.permute.xlu1 %185 }
  0xcd   :  { %v266_v20 = vpop.permute.xlu0 %265 }
  0xcf   :  { %v268_v29 = vpop.permute.xlu1 %267 }
  0xd0   :  { %v270_v32 = vsel %vm269_vm2, %v266_v20, %v268_v29  ;;  %v271_v36 = vsel %vm269_vm2, %v268_v29, %v266_v20 }
  0xd1   :  { %v2049_v4 = vmul.f32 %v1672_v13, %v271_v36  ;;  %v2052_v28 = vmul.f32 %v1675_v14, %v270_v32  ;;  %v380_v51 = vpop.permute.xlu0 %379 }
  0xd3   :  { %2995 = vst [vmem:[#allocation79_spill] sm:$0xff] %v2049_v4  ;;  %2996 = vst [vmem:[#allocation80_spill] sm:$0xff] %v2052_v28  ;;  %v382_v20 = vpop.permute.xlu1 %381  ;;  %v2067_v29 = vmul.f32 %v295_v22, %v2052_v28  ;;  %v2072_v32 = vmul.f32 %v295_v22, %v2049_v4  ;;  %v2077_v33 = vmul.f32 %v307_v27, %v2052_v28 }
  0xd4   :  { %v2082_v24 = vmul.f32 %v307_v27, %v2049_v4  ;;  %v384_v37 = vsel %vm383_vm3, %v380_v51, %v382_v20  ;;  %v385_v58 = vsel %vm383_vm3, %v382_v20, %v380_v51  ;;  %v2091_v22 = vmul.f32 %v319_v39, %v2052_v28 }
  0xd5   :  { %v2096_v36 = vmul.f32 %v319_v39, %v2049_v4  ;;  %v2099_v54 = vmul.f32 %v1678_v15, %v385_v58  ;;  %v2102_v27 = vmul.f32 %v1682_v17, %v384_v37  ;;  %v158_v31 = vpop.permute.xlu0 %157  ;;  %v2107_v51 = vmul.f32 %v343_v55, %v2052_v28 }
  0xd6   :  { %v2112_v20 = vmul.f32 %v343_v55, %v2049_v4  ;;  %v162_v39 = vsel %vm161_vm4, %v2006_v63, %v158_v31  ;;  %v163_v58 = vsel %vm161_vm4, %v158_v31, %v2006_v63  ;;  %v2123_v37 = vmul.f32 %v355_v30, %v2052_v28 }
  0xd7   :  { %v2128_v44 = vmul.f32 %v355_v30, %v2049_v4  ;;  %v2131_v55 = vmul.f32 %v1685_v18, %v163_v58  ;;  %v2134_v19 = vmul.f32 %v1692_v21, %v162_v39  ;;  %v188_v63 = vpop.permute.xlu1 %187  ;;  %v3005_v31 = vstv %s1628_s6  ;;  %s3012_s6 = sld [smem:[#allocation28_spill]] }
  0xd8   :  { %3001 = vst [vmem:[#allocation83_spill] sm:$0xff] %v2123_v37  ;;  %v2139_v16 = vmul.f32 %v3005_v31, %v2102_v27  ;;  %v3007_v26 = vmov %v3005_v31  ;;  %v189_v30 = vsel %vm161_vm4, %v186_v45, %v188_v63  ;;  %v190_v39 = vsel %vm161_vm4, %v188_v63, %v186_v45 }
  0xd9   :  { %3002 = vst [vmem:[#allocation84_spill] sm:$0xff] %v2128_v44  ;;  %v2144_v2 = vmul.f32 %v3007_v26, %v2099_v54  ;;  %v3009_v58 = vstv %s2999_s15  ;;  %v2161_v26 = vmul.f32 %v190_v39, %v1685_v18  ;;  %v2164_v41 = vmul.f32 %v189_v30, %v1692_v21  ;;  %v286_v12 = vpop.permute.xlu0 %285  ;;  %s3023_s15 = sld [smem:[#allocation20_spill]] }
  0xda   :  { %v2153_v56 = vmul.f32 %v3009_v58, %v2102_v27  ;;  %v3011_v31 = vmov %v3009_v58  ;;  %v3013_v45 = vstv %s3000_s16  ;;  %v3017_v21 = vstv %s3004_s22  ;;  %s3024_s16 = sld [smem:[#allocation23_spill]] }
  0xdb   :  { %v2158_v50 = vmul.f32 %v3011_v31, %v2099_v54  ;;  %v197_v63 = vmul.f32 %v3013_v45, %v2134_v19  ;;  %v3014_v58 = vmov %v3013_v45  ;;  %v3015_v31 = vstv %s3003_s19  ;;  %v288_v60 = vpop.permute.xlu1 %287  ;;  %s3033_s19 = sld [smem:[#allocation29_spill]] }
  0xdc   :  { %v196_v25 = vmul.f32 %v3014_v58, %v2131_v55  ;;  %v207_v35 = vmul.f32 %v3015_v31, %v2134_v19  ;;  %v3016_v18 = vmov %v3015_v31  ;;  %v217_v30 = vmul.f32 %v3017_v21, %v2134_v19 }
  0xdd   :  { %v206_v39 = vmul.f32 %v3016_v18, %v2131_v55  ;;  %v2185_v1 = vmul.f32 %v3018_v40, %v2102_v27  ;;  %v200_v45 = vmul.f32 %v3019_v5, %v2164_v41  ;;  %v199_v58 = vmul.f32 %v3020_v8, %v2161_v26  ;;  %v400_v34 = vpop.permute.xlu0 %399 }
  0xde   :  { %v3021_v31 = vstv %s3010_s28  ;;  %v289_v40 = vsel %vm269_vm2, %v286_v12, %v288_v60  ;;  %v290_v21 = vsel %vm269_vm2, %v288_v60, %v286_v12  ;;  %v3025_v5 = vstv %s3012_s6  ;;  %s3027_s28 = sld [smem:[#allocation32_spill]]  ;;  %s3041_s6 = sld [smem:[#allocation33_spill]] }
  0xdf   :  { %v210_v7 = vmul.f32 %v3021_v31, %v2164_v41  ;;  %v3022_v18 = vmov %v3021_v31  ;;  %v220_v61 = vmul.f32 %v3025_v5, %v2164_v41  ;;  %v3026_v8 = vstv %s3004_s22  ;;  %s3035_s22 = sld [smem:[#allocation30_spill]] }
  0xe0   :  { %v209_v53 = vmul.f32 %v3022_v18, %v2161_v26  ;;  %v216_v23 = vmul.f32 %v3026_v8, %v2131_v55  ;;  %v2210_v31 = vmul.f32 %v290_v21, %v1672_v13  ;;  %v2213_v18 = vmul.f32 %v289_v40, %v1675_v14 }
  0xe1   :  { %v202_v4 = vadd.f32 %v200_v45, %v197_v63  ;;  %v201_v49 = vadd.f32 %v199_v58, %v196_v25  ;;  %v212_v28 = vadd.f32 %v210_v7, %v207_v35  ;;  %v222_v12 = vadd.f32 %v220_v61, %v217_v30  ;;  %v676_v30 = vpop.permute.xlu0 %675 }
  0xe2   :  { %v211_v44 = vadd.f32 %v209_v53, %v206_v39  ;;  %v3028_v60 = vmov %v3025_v5  ;;  %v402_v5 = vpop.permute.xlu1 %401  ;;  %v3029_v57 = vstv %s3023_s15  ;;  %v3031_v37 = vstv %s3024_s16  ;;  %s3044_s15 = sld [smem:[#allocation34_spill]]  ;;  %s3046_s16 = sld [smem:[#allocation35_spill]] }
  0xe3   :  { %v219_v43 = vmul.f32 %v3028_v60, %v2161_v26  ;;  %v300_v8 = vmul.f32 %v3029_v57, %v2213_v18  ;;  %v3030_v13 = vmov %v3029_v57  ;;  %v312_v14 = vmul.f32 %v3031_v37, %v2213_v18 }
  0xe4   :  { %v299_v21 = vmul.f32 %v3030_v13, %v2210_v31  ;;  %v3032_v63 = vmov %v3031_v37  ;;  %v403_v7 = vsel %vm383_vm3, %v400_v34, %v402_v5  ;;  %v404_v35 = vsel %vm383_vm3, %v402_v5, %v400_v34 }
  0xe5   :  { %v311_v25 = vmul.f32 %v3032_v63, %v2210_v31  ;;  %v3034_v61 = vstv %s3027_s28  ;;  %v2237_v53 = vadd.f32 %v219_v43, %v216_v23  ;;  %v2240_v39 = vmul.f32 %v404_v35, %v1678_v15  ;;  %s3047_s28 = sld [smem:[#allocation36_spill]] }
  0xe6   :  { %v324_v57 = vmul.f32 %v3034_v61, %v2213_v18  ;;  %v2243_v37 = vmul.f32 %v403_v7, %v1682_v17  ;;  %v302_v45 = vadd.f32 %v300_v8, %v2067_v29  ;;  %v301_v34 = vadd.f32 %v299_v21, %v2072_v32  ;;  %v678_v17 = vpop.permute.xlu1 %677 }
  0xe7   :  { %v314_v58 = vadd.f32 %v312_v14, %v2077_v33  ;;  %v313_v40 = vadd.f32 %v311_v25, %v2082_v24  ;;  %v3036_v15 = vmov %v3034_v61  ;;  %v3037_v5 = vstv %s3033_s19  ;;  %v696_v14 = vpop.permute.xlu0 %695  ;;  %s3055_s19 = sld [smem:[#allocation37_spill]] }
  0xe8   :  { %v326_v43 = vadd.f32 %v324_v57, %v2091_v22  ;;  %v2254_v23 = vmul.f32 %v3036_v15, %v2210_v31  ;;  %v304_v60 = vadd.f32 %v302_v45, %v202_v4  ;;  %v414_v13 = vmul.f32 %v3037_v5, %v2243_v37 }
  0xe9   :  { %v303_v63 = vadd.f32 %v301_v34, %v201_v49  ;;  %v3038_v29 = vmov %v3037_v5  ;;  %v680_v33 = vsel %vm679_vm5, %v676_v30, %v678_v17  ;;  %v681_v24 = vsel %vm679_vm5, %v678_v17, %v676_v30 }
  0xea   :  { %v413_v32 = vmul.f32 %v3038_v29, %v2240_v39  ;;  %v316_v22 = vadd.f32 %v314_v58, %v212_v28  ;;  %v3040_v8 = vstv %s3035_s22  ;;  %v2270_v4 = vmul.f32 %v1758_v0, %v680_v33  ;;  %v698_v45 = vpop.permute.xlu1 %697  ;;  %s3056_s22 = sld [smem:[#allocation38_spill]] }
  0xeb   :  { %v426_v21 = vmul.f32 %v3040_v8, %v2243_v37  ;;  %v2273_v49 = vmul.f32 %v1761_v3, %v681_v24  ;;  %v416_v25 = vadd.f32 %v414_v13, %v2139_v16  ;;  %v315_v61 = vadd.f32 %v313_v40, %v211_v44  ;;  %v790_v13 = vpop.permute.xlu0 %789 }
  0xec   :  { %v415_v7 = vadd.f32 %v413_v32, %v2144_v2  ;;  %v3042_v28 = vmov %v3040_v8  ;;  %v328_v30 = vadd.f32 %v326_v43, %v222_v12  ;;  %v3043_v58 = vstv %s3039_s23  ;;  %s3057_s23 = sld [smem:[#allocation40_spill]] }
  0xed   :  { %v428_v35 = vadd.f32 %v426_v21, %v2153_v56  ;;  %v425_v57 = vmul.f32 %v3042_v28, %v2240_v39  ;;  %v418_v34 = vadd.f32 %v416_v25, %v304_v60  ;;  %v707_v15 = vmul.f32 %v3043_v58, %v2273_v49 }
  0xee   :  { %v417_v17 = vadd.f32 %v415_v7, %v303_v63  ;;  %v3045_v5 = vmov %v3043_v58  ;;  %v699_v56 = vsel %vm679_vm5, %v696_v14, %v698_v45  ;;  %v700_v2 = vsel %vm679_vm5, %v698_v45, %v696_v14  ;;  %v792_v21 = vpop.permute.xlu1 %791 }
  0xef   :  { %v706_v16 = vmul.f32 %v3045_v5, %v2270_v4  ;;  %v430_v44 = vadd.f32 %v428_v35, %v316_v22  ;;  %v3048_v12 = vstv %s3041_s6  ;;  %v2295_v43 = vmul.f32 %v699_v56, %v1758_v0  ;;  %s3058_s6 = sld [smem:[#allocation42_spill]] }
  0xf0   :  { %v719_v40 = vmul.f32 %v3048_v12, %v2273_v49  ;;  %v2298_v60 = vmul.f32 %v700_v2, %v1761_v3  ;;  %v516_v63 = vadd.f32 %v1782_v38, %v418_v34  ;;  %v515_v29 = vadd.f32 %v1797_v48, %v417_v17  ;;  %v810_v17 = vpop.permute.xlu0 %809 }
  0xf1   :  { %v542_v32 = vadd.f32 %v1811_v62, %v430_v44  ;;  %v427_v33 = vadd.f32 %v425_v57, %v2158_v50  ;;  %v3049_v24 = vmov %v3048_v12  ;;  %v3050_v0 = vstv %s3044_s15 }
  0xf2   :  { %v718_v22 = vmul.f32 %v3049_v24, %v2270_v4  ;;  %v438_v8 = vmul.f32 %v3050_v0, %v2243_v37  ;;  %v3051_v3 = vstv %s3046_s16  ;;  %v3053_v38 = vstv %s3047_s28  ;;  %s3060_s16 = sld [smem:[#allocation46_spill]]  ;;  %s3062_s28 = sld [smem:[#allocation39_spill]] }
  0xf3   :  { %v710_v14 = vmul.f32 %v3051_v3, %v2298_v60  ;;  %v3052_v25 = vmov %v3051_v3  ;;  %v722_v48 = vmul.f32 %v3053_v38, %v2298_v60  ;;  %v3054_v62 = vmov %v3053_v38 }
  0xf4   :  { %v709_v7 = vmul.f32 %v3052_v25, %v2295_v43  ;;  %v721_v35 = vmul.f32 %v3054_v62, %v2295_v43  ;;  %v794_v50 = vsel %vm793_vm6, %v790_v13, %v792_v21  ;;  %v795_v28 = vsel %vm793_vm6, %v792_v21, %v790_v13  ;;  %v904_v21 = vpop.permute.xlu0 %903 }
  0xf5   :  { %v429_v57 = vadd.f32 %v427_v33, %v315_v61  ;;  %v440_v45 = vadd.f32 %v438_v8, %v2185_v1  ;;  %v2329_v34 = vmul.f32 %v1790_v46, %v794_v50  ;;  %v2332_v58 = vmul.f32 %v1793_v47, %v795_v28  ;;  %v812_v61 = vpop.permute.xlu1 %811 }
  0xf6   :  { %v712_v5 = vadd.f32 %v710_v14, %v707_v15  ;;  %v711_v56 = vadd.f32 %v709_v7, %v706_v16  ;;  %v724_v2 = vadd.f32 %v722_v48, %v719_v40  ;;  %v723_v12 = vadd.f32 %v721_v35, %v718_v22 }
  0xf7   :  { %v541_v44 = vadd.f32 %v1824_v10, %v429_v57  ;;  %v442_v13 = vadd.f32 %v440_v45, %v328_v30  ;;  %v3059_v33 = vstv %s3055_s19  ;;  %v813_v10 = vsel %vm793_vm6, %v810_v17, %v812_v61  ;;  %s3065_s19 = sld [smem:[#allocation48_spill]] }
  0xf8   :  { %v714_v1 = vadd.f32 %v712_v5, %v516_v63  ;;  %v821_v24 = vmul.f32 %v3059_v33, %v2332_v58  ;;  %v713_v0 = vadd.f32 %v711_v56, %v515_v29  ;;  %v3061_v8 = vmov %v3059_v33 }
  0xf9   :  { %v820_v15 = vmul.f32 %v3061_v8, %v2329_v34  ;;  %v814_v30 = vsel %vm793_vm6, %v812_v61, %v810_v17  ;;  %v726_v16 = vadd.f32 %v724_v2, %v542_v32  ;;  %v3064_v40 = vstv %s3056_s22  ;;  %v906_v50 = vpop.permute.xlu1 %905  ;;  %s3074_s22 = sld [smem:[#allocation43_spill]] }
  0xfa   :  { %v833_v63 = vmul.f32 %v3064_v40, %v2332_v58  ;;  %v2349_v22 = vmul.f32 %v813_v10, %v1790_v46  ;;  %v2352_v29 = vmul.f32 %v814_v30, %v1793_v47  ;;  %v725_v3 = vadd.f32 %v723_v12, %v541_v44  ;;  %v924_v10 = vpop.permute.xlu0 %923 }
  0xfb   :  { %v3066_v14 = vmov %v3064_v40  ;;  %v568_v7 = vadd.f32 %v1844_v9, %v442_v13  ;;  %v3067_v38 = vstv %s3057_s23  ;;  %v3068_v48 = vstv %s3058_s6 }
  0xfc   :  { %v832_v25 = vmul.f32 %v3066_v14, %v2329_v34  ;;  %v731_v32 = vmul.f32 %v3067_v38, %v2273_v49  ;;  %v734_v62 = vmul.f32 %v3068_v48, %v2298_v60  ;;  %v3069_v46 = vstv %s3060_s16 }
  0xfd   :  { %v845_v35 = vmul.f32 %v3069_v46, %v2332_v58  ;;  %v3070_v47 = vstv %s3062_s28  ;;  %v3072_v17 = vstv %s3063_s26  ;;  %v908_v2 = vsel %vm907_vm7, %v904_v21, %v906_v50  ;;  %s3076_s26 = sld [smem:[#allocation44_spill]]  ;;  %s3078_s28 = sld [smem:[#allocation45_spill]] }
  0xfe   :  { %v824_v28 = vmul.f32 %v3070_v47, %v2352_v29  ;;  %v3071_v57 = vmov %v3070_v47  ;;  %v836_v5 = vmul.f32 %v3072_v17, %v2352_v29  ;;  %v3073_v9 = vmov %v3072_v17 }
  0xff   :  { %v823_v45 = vmul.f32 %v3071_v57, %v2349_v22  ;;  %v835_v56 = vmul.f32 %v3073_v9, %v2349_v22  ;;  %v909_v44 = vsel %vm907_vm7, %v906_v50, %v904_v21  ;;  %v736_v12 = vadd.f32 %v734_v62, %v731_v32  ;;  %v926_v32 = vpop.permute.xlu1 %925 }
 0x100   :  { %v3075_v13 = vstv %s3065_s19  ;;  %v2387_v33 = vmul.f32 %v1820_v6, %v908_v2  ;;  %v2390_v8 = vmul.f32 %v1840_v42, %v909_v44  ;;  %v826_v30 = vadd.f32 %v824_v28, %v821_v24 }
 0x101   :  { %v848_v61 = vmul.f32 %v3075_v13, %v2352_v29  ;;  %v825_v40 = vadd.f32 %v823_v45, %v820_v15  ;;  %v838_v14 = vadd.f32 %v836_v5, %v833_v63  ;;  %v837_v38 = vadd.f32 %v835_v56, %v832_v25 }
 0x102   :  { %v738_v48 = vadd.f32 %v736_v12, %v568_v7  ;;  %v828_v62 = vadd.f32 %v826_v30, %v714_v1  ;;  %v3077_v46 = vstv %s3074_s22  ;;  %v927_v24 = vsel %vm907_vm7, %v924_v10, %v926_v32  ;;  %s2414_s22 = sld [smem:[#allocation3 + $0x4b]] }
 0x103   :  { %v850_v21 = vadd.f32 %v848_v61, %v845_v35  ;;  %v935_v50 = vmul.f32 %v3077_v46, %v2390_v8  ;;  %v827_v47 = vadd.f32 %v825_v40, %v713_v0  ;;  %v3079_v57 = vmov %v3077_v46 }
 0x104   :  { %v934_v17 = vmul.f32 %v3079_v57, %v2387_v33  ;;  %v928_v15 = vsel %vm907_vm7, %v926_v32, %v924_v10  ;;  %v840_v1 = vadd.f32 %v838_v14, %v726_v16  ;;  %v3082_v63 = vstv %s3076_s26  ;;  %s3098_s26 = sld [smem:[#allocation51_spill]] }
 0x105   :  { %v947_v25 = vmul.f32 %v3082_v63, %v2390_v8  ;;  %v2406_v0 = vmul.f32 %v927_v24, %v1820_v6  ;;  %v2409_v7 = vmul.f32 %v928_v15, %v1840_v42  ;;  %v839_v35 = vadd.f32 %v837_v38, %v725_v3 }
 0x106   :  { %v3083_v28 = vmov %v3082_v63  ;;  %v852_v5 = vadd.f32 %v850_v21, %v738_v48  ;;  %v3084_v16 = vstv %s1805_s4  ;;  %v325_v56 = vadd.f32 %v2254_v23, %v2096_v36 }
 0x107   :  { %v946_v45 = vmul.f32 %v3083_v28, %v2387_v33  ;;  %v959_v9 = vmul.f32 %v3084_v16, %v2390_v8  ;;  %v3085_v6 = vstv %s3006_s8  ;;  %v3086_v44 = vstv %s3078_s28  ;;  %s2446_s8 = sld [smem:[#allocation3 + $0x1b]]  ;;  %s3099_s28 = sld [smem:[#allocation56_spill]] }
 0x108   :  { %v434_v2 = vmul.f32 %v3085_v6, %v2099_v54  ;;  %v938_v42 = vmul.f32 %v3086_v44, %v2409_v7  ;;  %v3087_v3 = vmov %v3086_v44  ;;  %v3088_v13 = vstv %s3080_s20  ;;  %s3094_s20 = sld [smem:[#allocation49_spill]] }
 0x109   :  { %v937_v12 = vmul.f32 %v3087_v3, %v2406_v0  ;;  %v950_v61 = vmul.f32 %v3088_v13, %v2409_v7  ;;  %v3089_v10 = vmov %v3088_v13  ;;  %v3090_v40 = vstv %s3081_s2  ;;  %s3108_s2 = sld [smem:[#allocation60_spill]] }
 0x10a   :  { %v949_v30 = vmul.f32 %v3089_v10, %v2406_v0  ;;  %v962_v36 = vmul.f32 %v3090_v40, %v2409_v7  ;;  %v327_v23 = vadd.f32 %v325_v56, %v2237_v53  ;;  %v3091_v14 = vstv %s3044_s15  ;;  %s3096_s15 = sld [smem:[#allocation50_spill]] }
 0x10b   :  { %v437_v38 = vmul.f32 %v3091_v14, %v2240_v39  ;;  %v3092_v48 = vstv %s3057_s23  ;;  %v940_v32 = vadd.f32 %v938_v42, %v935_v50  ;;  %v939_v46 = vadd.f32 %v937_v12, %v934_v17  ;;  %s3097_s23 = sld [smem:[#allocation53_spill]] }
 0x10c   :  { %v730_v21 = vmul.f32 %v3092_v48, %v2270_v4  ;;  %v952_v57 = vadd.f32 %v950_v61, %v947_v25  ;;  %v951_v24 = vadd.f32 %v949_v30, %v946_v45  ;;  %v964_v15 = vadd.f32 %v962_v36, %v959_v9 }
 0x10d   :  { %v439_v63 = vadd.f32 %v437_v38, %v434_v2  ;;  %v3093_v28 = vstv %s3058_s6  ;;  %v3095_v16 = vstv %s3060_s16  ;;  %v942_v6 = vadd.f32 %v940_v32, %v828_v62  ;;  %s1494_s6 = smov 48   ;;  %s3112_s16 = smov 32  }
 0x10e   :  { %v733_v53 = vmul.f32 %v3093_v28, %v2295_v43  ;;  %v844_v56 = vmul.f32 %v3095_v16, %v2329_v34  ;;  %v941_v50 = vadd.f32 %v939_v46, %v827_v47  ;;  %v954_v17 = vadd.f32 %v952_v57, %v840_v1 }
 0x10f   :  { %v953_v25 = vadd.f32 %v951_v24, %v839_v35  ;;  %v966_v45 = vadd.f32 %v964_v15, %v852_v5  ;;  %v441_v44 = vadd.f32 %v439_v63, %v327_v23  ;;  %v3100_v2 = vstv %s3065_s19  ;;  %1021 = vrot.lane.b32.xlu1 %v942_v6, %s1494_s6  ;;  %s1495_s19 = smov 16  }
 0x110   :  { %v735_v9 = vadd.f32 %v733_v53, %v730_v21  ;;  %v847_v42 = vmul.f32 %v3100_v2, %v2349_v22  ;;  %1019 = vrot.lane.b32.xlu0 %v941_v50, %s1494_s6  ;;  %v3101_v3 = vstv %s1805_s4  ;;  %v3102_v47 = vmov %v3090_v40  ;;  %s3110_s4 = sld [smem:[#allocation61_spill]]  ;;  %s3154_s6 = sld [smem:[#allocation63_spill]] }
 0x111   :  { %v958_v62 = vmul.f32 %v3101_v3, %v2387_v33  ;;  %v961_v1 = vmul.f32 %v3102_v47, %v2406_v0  ;;  %v3103_v35 = vstv %s3094_s20  ;;  %v858_v12 = vstv %s2414_s22  ;;  %s3121_s20 = sld [smem:[#allocation54_spill]] }
 0x112   :  { %v237_v5 = vmul.f32 %v3103_v35, %v2134_v19  ;;  %v567_v13 = vadd.f32 %v1906_v59, %v441_v44  ;;  %v849_v61 = vadd.f32 %v847_v42, %v844_v56  ;;  %v3104_v10 = vstv %s3096_s15  ;;  %s3124_s15 = sld [smem:[#allocation57_spill]] }
 0x113   :  { %v240_v30 = vmul.f32 %v3104_v10, %v2164_v41  ;;  %v3105_v40 = vstv %s3097_s23  ;;  %v963_v23 = vadd.f32 %v961_v1, %v958_v62  ;;  %v3106_v14 = vstv %s3098_s26  ;;  %1044 = vrot.lane.b32.xlu1 %v954_v17, %s3112_s16  ;;  %s3125_s23 = sld [smem:[#allocation58_spill]]  ;;  %s3128_s26 = sld [smem:[#allocation55_spill]] }
 0x114   :  { %v348_v36 = vmul.f32 %v3105_v40, %v2213_v18  ;;  %v459_v38 = vmul.f32 %v3106_v14, %v2102_v27  ;;  %v3107_v48 = vstv %s3099_s28  ;;  %v3109_v32 = vstv %s1855_s12  ;;  %1042 = vrot.lane.b32.xlu0 %v953_v25, %s3112_s16  ;;  %s3136_s12 = sld [smem:[#allocation66_spill]]  ;;  %s3152_s28 = sld [smem:[#allocation62_spill]] }
 0x115   :  { %v462_v21 = vmul.f32 %v3107_v48, %v2243_v37  ;;  %v755_v59 = vmul.f32 %v3109_v32, %v2273_v49  ;;  %v737_v46 = vadd.f32 %v735_v9, %v567_v13  ;;  %v242_v57 = vadd.f32 %v240_v30, %v237_v5 }
 0x116   :  { %v350_v24 = vadd.f32 %v348_v36, %v2107_v51  ;;  %v3111_v15 = vstv %s1857_s3  ;;  %v3113_v53 = vstv %s1869_s29  ;;  %v3114_v56 = vstv %s1871_s24  ;;  %s3135_s3 = sld [smem:[#allocation65_spill]]  ;;  %s3139_s29 = sld [smem:[#allocation67_spill]] }
 0x117   :  { %v758_v63 = vmul.f32 %v3111_v15, %v2298_v60  ;;  %v464_v28 = vadd.f32 %v462_v21, %v459_v38  ;;  %v869_v16 = vmul.f32 %v3113_v53, %v2332_v58  ;;  %v872_v6 = vmul.f32 %v3114_v56, %v2352_v29  ;;  %1068 = vrot.lane.b32.xlu1 %v966_v45, %s1495_s19  ;;  %s1496_s24 = smov 112  }
 0x118   :  { %v969_v50 = vstv %s2446_s8  ;;  %v851_v44 = vadd.f32 %v849_v61, %v737_v46  ;;  %v352_v51 = vadd.f32 %v350_v24, %v242_v57  ;;  %v3115_v2 = vstv %s3108_s2  ;;  %s3157_s2 = sld [smem:[#allocation59_spill]] }
 0x119   :  { %v760_v9 = vadd.f32 %v758_v63, %v755_v59  ;;  %v983_v17 = vmul.f32 %v3115_v2, %v2390_v8  ;;  %v874_v42 = vadd.f32 %v872_v6, %v869_v16  ;;  %v3116_v25 = vstv %s3110_s4 }
 0x11a   :  { %v986_v3 = vmul.f32 %v3116_v25, %v2409_v7  ;;  %v3117_v62 = vmov %v3103_v35  ;;  %v3118_v1 = vmov %v3104_v10  ;;  %v965_v5 = vadd.f32 %v963_v23, %v851_v44 }
 0x11b   :  { %v236_v47 = vmul.f32 %v3117_v62, %v2131_v55  ;;  %v239_v35 = vmul.f32 %v3118_v1, %v2161_v26  ;;  %v466_v13 = vadd.f32 %v464_v28, %v352_v51  ;;  %v3119_v61 = vmov %v3105_v40 }
 0x11c   :  { %v347_v10 = vmul.f32 %v3119_v61, %v2210_v31  ;;  %v3120_v30 = vmov %v3106_v14  ;;  %v988_v36 = vadd.f32 %v986_v3, %v983_v17  ;;  %v3122_v38 = vmov %v3107_v48  ;;  %1066 = vrot.lane.b32.xlu0 %v965_v5, %s1495_s19 }
 0x11d   :  { %v458_v40 = vmul.f32 %v3120_v30, %v2099_v54  ;;  %v241_v14 = vadd.f32 %v239_v35, %v236_v47  ;;  %v461_v48 = vmul.f32 %v3122_v38, %v2240_v39  ;;  %v3123_v23 = vmov %v3109_v32 }
 0x11e   :  { %v754_v21 = vmul.f32 %v3123_v23, %v2270_v4  ;;  %v620_v32 = vadd.f32 %v1942_v52, %v466_v13  ;;  %v349_v59 = vadd.f32 %v347_v10, %v2112_v20  ;;  %v3126_v46 = vmov %v3111_v15 }
 0x11f   :  { %v757_v57 = vmul.f32 %v3126_v46, %v2295_v43  ;;  %v3127_v45 = vmov %v3113_v53  ;;  %v463_v15 = vadd.f32 %v461_v48, %v458_v40  ;;  %v3129_v63 = vmov %v3114_v56  ;;  %v3140_v40 = vld [vmem:[#allocation83_spill] sm:$0xff] }
 0x120   :  { %v868_v24 = vmul.f32 %v3127_v45, %v2329_v34  ;;  %v871_v28 = vmul.f32 %v3129_v63, %v2349_v22  ;;  %v3130_v53 = vmov %v3115_v2  ;;  %v3131_v56 = vmov %v3116_v25 }
 0x121   :  { %v982_v16 = vmul.f32 %v3130_v53, %v2387_v33  ;;  %v985_v52 = vmul.f32 %v3131_v56, %v2406_v0  ;;  %v762_v20 = vadd.f32 %v760_v9, %v620_v32  ;;  %v351_v6 = vadd.f32 %v349_v59, %v241_v14  ;;  %v3143_v32 = vld [vmem:[#allocation69_spill] sm:$0xff] }
 0x122   :  { %v759_v44 = vadd.f32 %v757_v57, %v754_v21  ;;  %v3132_v51 = vstv %s3121_s20  ;;  %v873_v17 = vadd.f32 %v871_v28, %v868_v24  ;;  %v3133_v3 = vstv %s3124_s15 }
 0x123   :  { %v247_v2 = vmul.f32 %v3132_v51, %v2134_v19  ;;  %v987_v25 = vadd.f32 %v985_v52, %v982_v16  ;;  %v250_v62 = vmul.f32 %v3133_v3, %v2164_v41  ;;  %v3134_v47 = vstv %s3125_s23 }
 0x124   :  { %v360_v1 = vmul.f32 %v3134_v47, %v2213_v18  ;;  %v876_v35 = vadd.f32 %v874_v42, %v762_v20  ;;  %v465_v5 = vadd.f32 %v463_v15, %v351_v6  ;;  %v3137_v9 = vstv %s3128_s26 }
 0x125   :  { %v471_v13 = vmul.f32 %v3137_v9, %v2102_v27  ;;  %v3138_v61 = vstv %s1885_s9  ;;  %v252_v30 = vadd.f32 %v250_v62, %v247_v2  ;;  %v3141_v38 = vstv %s1901_s10  ;;  %s3160_s9 = sld [smem:[#allocation64_spill]] }
 0x126   :  { %v474_v10 = vmul.f32 %v3138_v61, %v2243_v37  ;;  %v362_v14 = vadd.f32 %v360_v1, %v3140_v40  ;;  %v767_v48 = vmul.f32 %v3141_v38, %v2273_v49  ;;  %v3142_v23 = vstv %s1903_s17 }
 0x127   :  { %v770_v21 = vmul.f32 %v3142_v23, %v2298_v60  ;;  %v990_v42 = vadd.f32 %v988_v36, %v876_v35  ;;  %v619_v59 = vadd.f32 %v3143_v32, %v465_v5  ;;  %v3144_v57 = vstv %s1911_s13  ;;  %s3203_s13 = sld [smem:[#allocation76_spill]] }
 0x128   :  { %v476_v46 = vadd.f32 %v474_v10, %v471_v13  ;;  %v881_v45 = vmul.f32 %v3144_v57, %v2332_v58  ;;  %v364_v24 = vadd.f32 %v362_v14, %v252_v30  ;;  %v3145_v63 = vstv %s3135_s3  ;;  %v3151_v30 = vld [vmem:[#allocation70_spill] sm:$0xff]  ;;  %v3153_v14 = vld [vmem:[#allocation84_spill] sm:$0xff] }
 0x129   :  { %v772_v15 = vadd.f32 %v770_v21, %v767_v48  ;;  %v884_v28 = vmul.f32 %v3145_v63, %v2352_v29  ;;  %v3146_v53 = vstv %s3136_s12  ;;  %1092 = vrot.lane.b32.xlu1 %v990_v42, %s1496_s24  ;;  %v761_v36 = vadd.f32 %v759_v44, %v619_v59 }
 0x12a   :  { %v995_v16 = vmul.f32 %v3146_v53, %v2390_v8  ;;  %v3147_v56 = vstv %s3139_s29  ;;  %v3148_v20 = vmov %v3132_v51  ;;  %v3149_v51 = vmov %v3133_v3 }
 0x12b   :  { %v998_v52 = vmul.f32 %v3147_v56, %v2409_v7  ;;  %v246_v6 = vmul.f32 %v3148_v20, %v2131_v55  ;;  %v249_v2 = vmul.f32 %v3149_v51, %v2161_v26  ;;  %v478_v3 = vadd.f32 %v476_v46, %v364_v24 }
 0x12c   :  { %v886_v62 = vadd.f32 %v884_v28, %v881_v45  ;;  %v359_v1 = vmul.f32 %v3134_v47, %v2210_v31  ;;  %v3150_v35 = vmov %v3137_v9  ;;  %v875_v44 = vadd.f32 %v873_v17, %v761_v36 }
 0x12d   :  { %v470_v5 = vmul.f32 %v3150_v35, %v2099_v54  ;;  %v1000_v9 = vadd.f32 %v998_v52, %v995_v16  ;;  %v251_v13 = vadd.f32 %v249_v2, %v246_v6  ;;  %v473_v10 = vmul.f32 %v3138_v61, %v2240_v39 }
 0x12e   :  { %v646_v40 = vadd.f32 %v3151_v30, %v478_v3  ;;  %v361_v38 = vadd.f32 %v359_v1, %v3153_v14  ;;  %v3155_v48 = vstv %s1901_s10  ;;  %v3156_v21 = vstv %s1903_s17  ;;  %v3164_v3 = vld [vmem:[#allocation80_spill] sm:$0xff]  ;;  %s1497_s17 = smov 96  }
 0x12f   :  { %v766_v23 = vmul.f32 %v3155_v48, %v2270_v4  ;;  %v769_v42 = vmul.f32 %v3156_v21, %v2295_v43  ;;  %v989_v17 = vadd.f32 %v987_v25, %v875_v44  ;;  %v475_v32 = vadd.f32 %v473_v10, %v470_v5 }
 0x130   :  { %v3158_v59 = vmov %v3144_v57  ;;  %v3159_v57 = vmov %v3145_v63  ;;  %v774_v24 = vadd.f32 %v772_v15, %v646_v40  ;;  %v363_v63 = vadd.f32 %v361_v38, %v251_v13  ;;  %v3169_v38 = vld [vmem:[#allocation71_spill] sm:$0xff] }
 0x131   :  { %v880_v46 = vmul.f32 %v3158_v59, %v2329_v34  ;;  %v883_v45 = vmul.f32 %v3159_v57, %v2349_v22  ;;  %v771_v28 = vadd.f32 %v769_v42, %v766_v23  ;;  %v994_v16 = vmul.f32 %v3146_v53, %v2387_v33  ;;  %1090 = vrot.lane.b32.xlu0 %v989_v17, %s1496_s24 }
 0x132   :  { %v3161_v25 = vmov %v3147_v56  ;;  %v3162_v52 = vstv %s3152_s28  ;;  %v3163_v6 = vstv %s3154_s6  ;;  %v888_v51 = vadd.f32 %v886_v62, %v774_v24 }
 0x133   :  { %v885_v36 = vadd.f32 %v883_v45, %v880_v46  ;;  %v997_v56 = vmul.f32 %v3161_v25, %v2406_v0  ;;  %v257_v20 = vmul.f32 %v3162_v52, %v2134_v19  ;;  %v260_v15 = vmul.f32 %v3163_v6, %v2164_v41 }
 0x134   :  { %v477_v2 = vadd.f32 %v475_v32, %v363_v63  ;;  %v3165_v47 = vstv %s3157_s2  ;;  %v3166_v35 = vstv %s1953_s0  ;;  %v3167_v61 = vstv %s3160_s9 }
 0x135   :  { %v369_v1 = vmul.f32 %v3165_v47, %v3164_v3  ;;  %v372_v5 = vmul.f32 %v3166_v35, %v2213_v18  ;;  %v999_v44 = vadd.f32 %v997_v56, %v994_v16  ;;  %v262_v13 = vadd.f32 %v260_v15, %v257_v20 }
 0x136   :  { %v483_v10 = vmul.f32 %v3167_v61, %v2102_v27  ;;  %v3168_v30 = vstv %s1959_s5  ;;  %v1002_v14 = vadd.f32 %v1000_v9, %v888_v51  ;;  %v645_v62 = vadd.f32 %v3169_v38, %v477_v2 }
 0x137   :  { %v486_v40 = vmul.f32 %v3168_v30, %v2243_v37  ;;  %v374_v48 = vadd.f32 %v372_v5, %v369_v1  ;;  %v3170_v23 = vstv %s1969_s30  ;;  %v3171_v17 = vstv %s1971_s25  ;;  %v3178_v1 = vld [vmem:[#allocation79_spill] sm:$0xff]  ;;  %s3196_s25 = sld [smem:[#allocation74_spill]]  ;;  %s3198_s30 = sld [smem:[#allocation75_spill]] }
 0x138   :  { %v779_v21 = vmul.f32 %v3170_v23, %v2273_v49  ;;  %v782_v32 = vmul.f32 %v3171_v17, %v2298_v60  ;;  %v3172_v59 = vstv %s1980_s11  ;;  %v3173_v57 = vstv %s1982_s18  ;;  %1116 = vrot.lane.b32.xlu1 %v1002_v14, %s1497_s17 }
 0x139   :  { %v488_v42 = vadd.f32 %v486_v40, %v483_v10  ;;  %v893_v46 = vmul.f32 %v3172_v59, %v2332_v58  ;;  %v896_v45 = vmul.f32 %v3173_v57, %v2352_v29  ;;  %v773_v9 = vadd.f32 %v771_v28, %v645_v62 }
 0x13a   :  { %v376_v24 = vadd.f32 %v374_v48, %v262_v13  ;;  %v3174_v63 = vstv %s1988_s7  ;;  %v3175_v16 = vstv %s1995_s1  ;;  %v784_v56 = vadd.f32 %v782_v32, %v779_v21  ;;  %s3193_s1 = sld [smem:[#allocation73_spill]]  ;;  %s1500_s7 = smov [#allocation11]  }
 0x13b   :  { %v1007_v53 = vmul.f32 %v3174_v63, %v2390_v8  ;;  %v1010_v25 = vmul.f32 %v3175_v16, %v2409_v7  ;;  %v898_v52 = vadd.f32 %v896_v45, %v893_v46  ;;  %v3176_v20 = vstv %s3152_s28 }
 0x13c   :  { %v256_v6 = vmul.f32 %v3176_v20, %v2131_v55  ;;  %v3177_v15 = vstv %s3154_s6  ;;  %v887_v28 = vadd.f32 %v885_v36, %v773_v9  ;;  %v490_v2 = vadd.f32 %v488_v42, %v376_v24  ;;  %v3183_v36 = vld [vmem:[#allocation77_spill] sm:$0xff] }
 0x13d   :  { %v259_v51 = vmul.f32 %v3177_v15, %v2161_v26  ;;  %v1012_v47 = vadd.f32 %v1010_v25, %v1007_v53  ;;  %v3179_v35 = vstv %s3157_s2  ;;  %v3180_v61 = vstv %s1953_s0  ;;  %s3190_s0 = sld [smem:[#allocation72_spill]] }
 0x13e   :  { %v368_v5 = vmul.f32 %v3179_v35, %v3178_v1  ;;  %v371_v10 = vmul.f32 %v3180_v61, %v2210_v31  ;;  %v3181_v30 = vstv %s3160_s9  ;;  %v3182_v14 = vstv %s1959_s5  ;;  %s3187_s5 = sld [smem:[#allocation68_spill]] }
 0x13f   :  { %v261_v13 = vadd.f32 %v259_v51, %v256_v6  ;;  %v482_v40 = vmul.f32 %v3181_v30, %v2099_v54  ;;  %v485_v38 = vmul.f32 %v3182_v14, %v2240_v39  ;;  %v1001_v62 = vadd.f32 %v999_v44, %v887_v28 }
 0x140   :  { %v672_v48 = vadd.f32 %v3183_v36, %v490_v2  ;;  %v778_v21 = vmul.f32 %v3170_v23, %v2270_v4  ;;  %v3184_v42 = vmov %v3171_v17  ;;  %v373_v32 = vadd.f32 %v371_v10, %v368_v5  ;;  %v3200_v23 = vld [vmem:[#allocation78_spill] sm:$0xff] }
 0x141   :  { %v781_v17 = vmul.f32 %v3184_v42, %v2295_v43  ;;  %v487_v59 = vadd.f32 %v485_v38, %v482_v40  ;;  %v3185_v46 = vstv %s1980_s11  ;;  %v3186_v45 = vstv %s1982_s18  ;;  %1114 = vrot.lane.b32.xlu0 %v1001_v62, %s1497_s17  ;;  %s2687_s18 = sld [smem:[#allocation3 + $0x4c]]  ;;  %s3216_s11 = sld [smem:[#allocation85_spill]] }
 0x142   :  { %v892_v57 = vmul.f32 %v3185_v46, %v2329_v34  ;;  %v895_v9 = vmul.f32 %v3186_v45, %v2349_v22  ;;  %v786_v44 = vadd.f32 %v784_v56, %v672_v48  ;;  %v1006_v53 = vmul.f32 %v3174_v63, %v2387_v33 }
 0x143   :  { %v783_v24 = vadd.f32 %v781_v17, %v778_v21  ;;  %v1009_v25 = vmul.f32 %v3175_v16, %v2406_v0  ;;  %v375_v20 = vadd.f32 %v373_v32, %v261_v13  ;;  %v3188_v15 = vstv %s1955_s14 }
 0x144   :  { %v897_v6 = vadd.f32 %v895_v9, %v892_v57  ;;  %v226_v51 = vmul.f32 %v3188_v15, %v2131_v55  ;;  %v3189_v28 = vmov %v3188_v15  ;;  %v900_v56 = vadd.f32 %v898_v52, %v786_v44 }
 0x145   :  { %v227_v2 = vmul.f32 %v3189_v28, %v2134_v19  ;;  %v1011_v35 = vadd.f32 %v1009_v25, %v1006_v53  ;;  %v3191_v5 = vstv %s1963_s27  ;;  %v489_v30 = vadd.f32 %v487_v59, %v375_v20  ;;  %s1498_s27 = smov 80  }
 0x146   :  { %v229_v61 = vmul.f32 %v3191_v5, %v2161_v26  ;;  %v3192_v10 = vmov %v3191_v5  ;;  %v3194_v40 = vstv %s3187_s5  ;;  %v3197_v38 = vstv %s2004_s21  ;;  %s1228_s21 = sshll.u32 %s1500_s7, 4  ;;  %s1229_s21 = int_to_ptr.vmem [resolvable:$true] %s1228_s21 }
 0x147   :  { %v230_v13 = vmul.f32 %v3192_v10, %v2164_v41  ;;  %v332_v55 = vmul.f32 %v3194_v40, %v3178_v1  ;;  %v3195_v19 = vmov %v3194_v40  ;;  %v335_v52 = vmul.f32 %v3197_v38, %v2210_v31  ;;  %s1451_s22 = scalar_lea.vmem %s1229_s21, 256  ;;  %p1456_p2 = scmp.lt.s32.totalorder %s1229_s21, %s1229_s21 }
 0x148   :  { %v333_v14 = vmul.f32 %v3195_v19, %v3164_v3  ;;  %v1014_v62 = vadd.f32 %v1012_v47, %v900_v56  ;;  %v231_v36 = vadd.f32 %v229_v61, %v226_v51  ;;  %v3199_v41 = vmov %v3197_v38  ;;  %p1452_p1 = scmp.ne.s32.totalorder %s1229_s21, %s1451_s22  ;;  %p1457_p3 = scmp.lt.s32.totalorder %s1451_s22, %s1451_s22 }
 0x149   :  { %v232_v26 = vadd.f32 %v230_v13, %v227_v2  ;;  %v336_v48 = vmul.f32 %v3199_v41, %v2213_v18  ;;  %v671_v21 = vadd.f32 %v3200_v23, %v489_v30  ;;  %v337_v42 = vadd.f32 %v335_v52, %v332_v55  ;;  %v3212_v13 = vld [vmem:[#allocation81_spill] sm:$0xff]  ;;  %v3213_v30 = vld [vmem:[#allocation82_spill] sm:$0xff] }
 0x14a   :  { %v3201_v1 = vstv %s3190_s0  ;;  %1140 = vrot.lane.b32.xlu1 %v1014_v62, %s1498_s27  ;;  %v3204_v47 = vstv %s3193_s1  ;;  %v3206_v57 = vstv %s3196_s25  ;;  %p1458_p4 = por %p1457_p3, %p1456_p2 }
 0x14b   :  { %v446_v17 = vmul.f32 %v3201_v1, %v2099_v54  ;;  %v3202_v3 = vmov %v3201_v1  ;;  %v338_v31 = vadd.f32 %v336_v48, %v333_v14  ;;  %v449_v59 = vmul.f32 %v3204_v47, %v2240_v39  ;;  %v3215_v1 = vld [vmem:[#allocation25_spill] sm:$0xff] }
 0x14c   :  { %v447_v32 = vmul.f32 %v3202_v3, %v2102_v27  ;;  %v3205_v18 = vmov %v3204_v47  ;;  %v742_v45 = vmul.f32 %v3206_v57, %v2270_v4  ;;  %v785_v9 = vadd.f32 %v783_v24, %v671_v21  ;;  %v1074_v3 = vld [vmem:[#allocation8 + $0x4] sm:$0x3]  ;;  %p1459_p5 = pnand %p1458_p4, %p1452_p1 }
 0x14d   :  { %v450_v46 = vmul.f32 %v3205_v18, %v2243_v37  ;;  %v339_v54 = vadd.f32 %v337_v42, %v231_v36  ;;  %v3207_v44 = vmov %v3206_v57  ;;  %v3208_v63 = vstv %s3198_s30  ;;  %v1026_v42 = vld [vmem:[#allocation8] sm:$0x3]  ;;  %v1098_v18 = vld [vmem:[#allocation8 + $0x8] sm:$0x3] }
 0x14e   :  { %v743_v27 = vmul.f32 %v3207_v44, %v2273_v49  ;;  %v745_v53 = vmul.f32 %v3208_v63, %v2295_v43  ;;  %v340_v16 = vadd.f32 %v338_v31, %v232_v26  ;;  %v451_v39 = vadd.f32 %v449_v59, %v446_v17 }
 0x14f   :  { %v452_v25 = vadd.f32 %v450_v46, %v447_v32  ;;  %v3209_v37 = vmov %v3208_v63  ;;  %v899_v15 = vadd.f32 %v897_v6, %v785_v9  ;;  %v3210_v24 = vstv %s3203_s13 }
 0x150   :  { %v746_v20 = vmul.f32 %v3209_v37, %v2298_v60  ;;  %v747_v4 = vadd.f32 %v745_v53, %v742_v45  ;;  %v856_v51 = vmul.f32 %v3210_v24, %v2329_v34  ;;  %v972_v28 = vstv %s2687_s18 }
 0x151   :  { %v453_v2 = vadd.f32 %v451_v39, %v339_v54  ;;  %v454_v49 = vadd.f32 %v452_v25, %v340_v16  ;;  %v859_v43 = vmul.f32 %v858_v12, %v2349_v22  ;;  %v1013_v5 = vadd.f32 %v1011_v35, %v899_v15  ;;  %v1122_v39 = vld [vmem:[#allocation8 + $0xa] sm:$0x3] }
 0x152   :  { %v748_v56 = vadd.f32 %v746_v20, %v743_v27  ;;  %v3211_v61 = vmov %v3210_v24  ;;  %v860_v60 = vmul.f32 %v858_v12, %v2352_v29  ;;  %v970_v6 = vmul.f32 %v969_v50, %v2387_v33 }
 0x153   :  { %v857_v10 = vmul.f32 %v3211_v61, %v2332_v58  ;;  %v593_v34 = vadd.f32 %v3212_v13, %v453_v2  ;;  %v594_v40 = vadd.f32 %v3213_v30, %v454_v49  ;;  %v861_v55 = vadd.f32 %v859_v43, %v856_v51  ;;  %1138 = vrot.lane.b32.xlu0 %v1013_v5, %s1498_s27  ;;  %v1146_v13 = vld [vmem:[#allocation8 + $0xc] sm:$0x3] }
 0x154   :  { %v973_v19 = vmul.f32 %v972_v28, %v2406_v0  ;;  %v971_v22 = vmul.f32 %v969_v50, %v2390_v8  ;;  %v974_v58 = vmul.f32 %v972_v28, %v2409_v7  ;;  %v1050_v8 = vld [vmem:[#allocation8 + $0x2] sm:$0x3]  ;;  %v3214_v50 = vld [vmem:[#allocation24_spill] sm:$0xff]  ;;  %v1035_v17 = vrot.slane %v1026_v42, %v3215_v1 }
 0x155   :  { %v862_v14 = vadd.f32 %v860_v60, %v857_v10  ;;  %v749_v35 = vadd.f32 %v747_v4, %v593_v34  ;;  %v750_v38 = vadd.f32 %v748_v56, %v594_v40  ;;  %v1031_v7 = vrot.slane %v1026_v42, %v3214_v50 }
 0x156   :  { %v975_v29 = vadd.f32 %v973_v19, %v970_v6  ;;  %v976_v12 = vadd.f32 %v974_v58, %v971_v22  ;;  %v1016_v46 = vstv %s3216_s11  ;;  %v1055_v57 = vrot.slane %v1050_v8, %v3214_v50 }
 0x157   :  { %v863_v52 = vadd.f32 %v861_v55, %v749_v35  ;;  %v864_v33 = vadd.f32 %v862_v14, %v750_v38  ;;  %v1059_v45 = vrot.slane %v1050_v8, %v3215_v1  ;;  %v1079_v44 = vrot.slane %v1074_v3, %v3214_v50 }
 0x158   :  { %v1083_v27 = vrot.slane %v1074_v3, %v3215_v1  ;;  %v1103_v16 = vrot.slane %v1098_v18, %v3214_v50  ;;  %v1107_v20 = vrot.slane %v1098_v18, %v3215_v1  ;;  %v1127_v43 = vrot.slane %v1122_v39, %v3214_v50 }
 0x159   :  { %v977_v62 = vadd.f32 %v975_v29, %v863_v52  ;;  %v978_v36 = vadd.f32 %v976_v12, %v864_v33  ;;  %v1131_v5 = vrot.slane %v1122_v39, %v3215_v1  ;;  %v1151_v22 = vrot.slane %v1146_v13, %v3214_v50 }
 0x15a   :  { %v1155_v58 = vrot.slane %v1146_v13, %v3215_v1 }
 0x15b   :  { %v1017_v15 = vadd.f32 %v1016_v46, %v977_v62  ;;  %v1018_v4 = vadd.f32 %v1016_v46, %v978_v36 }
 0x181   :  { %v1022_v26 = vpop.permute.xlu1 %1021 }
 0x182   :  { %v1020_v41 = vpop.permute.xlu0 %1019 }
 0x183   :  { %v1024_v47 = vsel %vm1023_vm8, %v1020_v41, %v1022_v26  ;;  %v1025_v59 = vsel %vm1023_vm8, %v1022_v26, %v1020_v41 }
 0x184   :  { %v1038_v63 = vmul.f32 %v1031_v7, %v1025_v59  ;;  %v1039_v53 = vmul.f32 %v1035_v17, %v1024_v47  ;;  %v1499_v47 = vmov 1966171168  }
 0x185   :  { %v1045_v48 = vpop.permute.xlu1 %1044  ;;  %v1178_v59 = vunpack.c.l.s4 %v1499_v47 }
 0x186   :  { %v1043_v23 = vpop.permute.xlu0 %1042  ;;  %v1040_v61 = vadd.f32 %v1038_v63, %v1017_v15  ;;  %v1041_v10 = vadd.f32 %v1039_v53, %v1018_v4  ;;  %v1371_v4 = vld [vmem:[#allocation10] sm:$0xff] }
 0x187   :  { %v1047_v9 = vsel %vm1046_vm9, %v1043_v23, %v1045_v48  ;;  %v1048_v54 = vsel %vm1046_vm9, %v1045_v48, %v1043_v23  ;;  %v1179_v18 = vunpack.c.0.s8 %v1178_v59 }
 0x188   :  { %v1062_v24 = vmul.f32 %v1055_v57, %v1048_v54  ;;  %v1063_v51 = vmul.f32 %v1059_v45, %v1047_v9  ;;  %v3217_v57 = vld [vmem:[#allocation18_spill] sm:$0xff] }
 0x189   :  { %v1069_v0 = vpop.permute.xlu1 %1068  ;;  %v1182_v45 = vsub.s32 %v1179_v18, %v3217_v57 }
 0x18a   :  { %v1064_v40 = vadd.f32 %v1062_v24, %v1040_v61  ;;  %v1065_v55 = vadd.f32 %v1063_v51, %v1041_v10  ;;  %v1372_v51 = vld [vmem:[#allocation10 + $0x8] sm:$0xff] }
 0x18e   :  { %v1067_v21 = vpop.permute.xlu0 %1066 }
 0x18f   :  { %v1071_v25 = vsel %vm1070_vm10, %v1067_v21, %v1069_v0  ;;  %v1072_v37 = vsel %vm1070_vm10, %v1069_v0, %v1067_v21 }
 0x190   :  { %v1086_v60 = vmul.f32 %v1079_v44, %v1072_v37  ;;  %v1087_v6 = vmul.f32 %v1083_v27, %v1071_v25 }
 0x192   :  { %v1088_v35 = vadd.f32 %v1086_v60, %v1064_v40  ;;  %v1089_v38 = vadd.f32 %v1087_v6, %v1065_v55 }
 0x19b   :  { %v1093_v32 = vpop.permute.xlu1 %1092 }
 0x1a3   :  { %v1091_v31 = vpop.permute.xlu0 %1090 }
 0x1a4   :  { %v1095_v49 = vsel %vm1094_vm11, %v1091_v31, %v1093_v32  ;;  %v1096_v56 = vsel %vm1094_vm11, %v1093_v32, %v1091_v31 }
 0x1a5   :  { %v1110_v19 = vmul.f32 %v1103_v16, %v1095_v49  ;;  %v1111_v14 = vmul.f32 %v1107_v20, %v1096_v56 }
 0x1a7   :  { %v1112_v33 = vadd.f32 %v1110_v19, %v1088_v35  ;;  %v1113_v62 = vadd.f32 %v1111_v14, %v1089_v38 }
 0x1aa   :  { %v1117_v28 = vpop.permute.xlu1 %1116 }
 0x1b3   :  { %v1115_v2 = vpop.permute.xlu0 %1114 }
 0x1b4   :  { %v1119_v34 = vsel %vm1118_vm12, %v1115_v2, %v1117_v28  ;;  %v1120_v30 = vsel %vm1118_vm12, %v1117_v28, %v1115_v2 }
 0x1b5   :  { %v1134_v29 = vmul.f32 %v1127_v43, %v1119_v34  ;;  %v1135_v12 = vmul.f32 %v1131_v5, %v1120_v30 }
 0x1b7   :  { %v1136_v48 = vadd.f32 %v1134_v29, %v1112_v33  ;;  %v1137_v23 = vadd.f32 %v1135_v12, %v1113_v62 }
 0x1bc   :  { %v1141_v52 = vpop.permute.xlu1 %1140 }
 0x1c5   :  { %v1139_v36 = vpop.permute.xlu0 %1138 }
 0x1c6   :  { %v1143_v26 = vsel %vm1142_vm13, %v1139_v36, %v1141_v52  ;;  %v1144_v41 = vsel %vm1142_vm13, %v1141_v52, %v1139_v36 }
 0x1c7   :  { %v1158_v0 = vmul.f32 %v1151_v22, %v1143_v26  ;;  %v1159_v21 = vmul.f32 %v1155_v58, %v1144_v41 }
 0x1c9   :  { %v1160_v42 = vadd.f32 %v1158_v0, %v1136_v48  ;;  %v1161_v11 = vadd.f32 %v1159_v21, %v1137_v23 }
 0x1cb   :  { %v1339_v8 = vmul.f32 -1.442695, %v1160_v42  ;;  %v1340_v7 = vmul.f32 -1.442695, %v1161_v11 }
 0x1cd   :  { %1363 = vpow2.f32 %v1339_v8 }
 0x1ce   :  { %1365 = vpow2.f32 %v1340_v7 }
 0x1d7   :  { %v1364_v17 = vpop.eup %1363 }
 0x1d8   :  { %v1366_v3 = vpop.eup %1365  ;;  %v1168_v32 = vadd.f32 1.0, %v1364_v17 }
 0x1d9   :  { %v1169_v31 = vadd.f32 1.0, %v1366_v3 }
 0x1da   :  { %1367 = vrcp.f32 %v1168_v32 }
 0x1db   :  { %1369 = vrcp.f32 %v1169_v31 }
 0x1e4   :  { %v1368_v46 = vpop.eup %1367 }
 0x1e5   :  { %v1370_v9 = vpop.eup %1369 }
 0x1e6   :  { %v1176_v54 = vcombine.low %v1368_v46, %v1370_v9 }
 0x1e8   :  { %v1183_v44 = vrot.slane %v1176_v54, %v1182_v45 }
 0x1ea   :  { %v1184_v27 = vcombine.high %v1183_v44, %v1183_v44  ;;  %v1191_v63 = vrot.slane %v1183_v44, %v1182_v45 }
 0x1ec   :  { %v1198_v53 = vrot.slane %v1184_v27, %v1182_v45  ;;  %v1202_v16 = vrot.slane %v1191_v63, %v3214_v50  ;;  %v1206_v39 = vrot.slane %v1191_v63, %v3215_v1 }
 0x1ee   :  { %v1210_v25 = vrot.slane %v1198_v53, %v3214_v50  ;;  %v1214_v37 = vrot.slane %v1198_v53, %v3215_v1  ;;  %v1215_v20 = vcombine.low %v1202_v16, %v1206_v39 }
 0x1f0   :  { %v1216_v15 = vcombine.low %v1210_v25, %v1214_v37  ;;  %v1219_v24 = vmul.f32 %v1371_v4, %v1215_v20 }
 0x1f2   :  { %v1220_v28 = vmul.f32 %v1372_v51, %v1216_v15  ;;  %1221 = vst [vmem:[#allocation11] sm:$0xff] %v1219_v24 }
 0x1f4   :  { %1222 = vst [vmem:[#allocation11 + $0x8] sm:$0xff] %v1220_v28 }
 0x1f5   :  { %1462 = shalt.err (!%p1459_p5)
}
 0x1f6   :  { %s3218_s16 = sld [smem:[#allocation86_spill]] }
 0x1fc   :  { %s1463_s19 = scalar_lea.hbm %s3218_s16, 256 }
 0x1fd   :  { %p1464_p6 = scmp.ne.s32.totalorder %s3218_s16, %s1463_s19  ;;  %p1467_p7 = scmp.lt.u32.totalorder %s1463_s19, %s3218_s16 }
 0x1ff   :  { %p1469_p8 = pnand %p1467_p7, %p1464_p6 }
 0x201   :  { %1472 = shalt.err (!%p1469_p8)
}
 0x202   :  { %s3219_s3 = smov 8   ;;  %s3220_s12 = smov 128  }
 0x203   :  { %1234 = dma.vmem_to_hbm [thread:$0]  %s1229_s21, 256, %s3218_s16, [#allocation5], %s3220_s12, %s3220_s12, %s3219_s3  }
 0x204   :  { %1479 = dma.done.wait [#allocation5], 256  }
 0x205   :  { %1480 = vsyncadd [#allocation5], 4294967040 }
 0x206   :  { %1238 = vsyncpa [#allocation4], 1 }
 0x207   :  { %1239 = vsyncpa [#allocation9], 1 }
 0x208   :  { %1240 = vsyncpa [#allocation5], 1 }
 0x209   :  { %1241 = vsyncpa [#allocation6], 1 }

</bundles_post_ra>
